<compile_context>
chip_gen: v7x
topology: tpu7x:2x2x1
jax: 0.10.0
libtpu: 0.0.40
codegen_flags: <defaults>
</compile_context>

<pallas_src>
import functools

import numpy as np

import jax
import jax.numpy as jnp
from jax import lax
from jax.experimental import pallas as pl
from jax.experimental.pallas import tpu as pltpu

n_embd = 384


# ---------------------------------------------------------------------------
# One-time parameter preparation (hoisted out of the per-call wrapper)
# ---------------------------------------------------------------------------
def prepare_mha_params(wq, wk, wv, w_proj_t, b_proj):
    """wq/wk/wv: (H, C, hs) pre-transposed per-head weights; w_proj_t: (C, C)
    pre-transposed projection weight; b_proj: (C,).  Returns fused bf16
    weights with the attention scale folded into the Q columns."""
    H, C, hs = wq.shape
    scale = float(hs) ** -0.5

    # (H, C, hs) -> (C, H*hs): column block h is head h's weight, matching the
    # torch.cat([h(x) for h in heads], dim=-1) ordering.
    def fuse(w):
        return jnp.transpose(w, (1, 0, 2)).reshape(C, H * hs)

    wqkv = jnp.concatenate(
        [fuse(wq) * scale,        # scale folded in f32, then cast once
         fuse(wk),
         fuse(wv)], axis=1).astype(jnp.bfloat16)               # (C, 3C)
    wp = w_proj_t.astype(jnp.bfloat16)                         # (C, C)
    bp = b_proj.reshape(1, C).astype(jnp.float32)              # (1, C)
    return wqkv, wp, bp


def _block_causal_bias(batch, seq):
    """Additive f32 mask over the folded (B*T) rows: 0 where (same batch AND
    causal), else a large finite negative (exp underflows to exactly 0).
    Built with numpy (static shapes) -> a baked constant under jit."""
    r = batch * seq
    idx = np.arange(r)
    same_batch = (idx[:, None] // seq) == (idx[None, :] // seq)
    causal = idx[None, :] <= idx[:, None]
    neg = np.float32(-0.7 * np.finfo(np.float32).max)
    bias = np.where(same_batch & causal, np.float32(0.0), neg).astype(np.float32)
    return jnp.asarray(bias)


# ---------------------------------------------------------------------------
# Fused kernel: QKV projection + per-head causal attention + output projection
# ---------------------------------------------------------------------------
def mha_fused_kernel(x_ref, wqkv_ref, wp_ref, bp_ref, mask_ref, o_ref, *,
                     num_heads, head_size):
    # x_ref   : (R, C)   folded rows R = B*T, bf16
    # wqkv_ref: (C, 3C)  [Wq*scale | Wk | Wv], bf16
    # wp_ref  : (C, C)   output projection weight (pre-transposed), bf16
    # bp_ref  : (1, C)   output projection bias, f32
    # mask_ref: (R, R)   additive block-diagonal-causal mask, f32
    # o_ref   : (R, C)   lane-dense output, f32
    C = x_ref.shape[1]
    hs = head_size

    x = x_ref[...]                                                  # (R, C) bf16

    # Fused QKV projection for all heads / all batch rows at once.
    qkv = jnp.dot(x, wqkv_ref[...], preferred_element_type=jnp.float32)  # (R, 3C)
    q = qkv[:, :C]
    k = qkv[:, C:2 * C]
    v = qkv[:, 2 * C:]

    bias = mask_ref[...]                                            # (R, R) f32

    outs = []
    # Heads in pairs: 2*hs = 128 lanes -> vreg-aligned slices / casts / concat.
    for start in range(0, num_heads, 2):
        n_in_group = min(2, num_heads - start)
        lo = start * hs
        width = n_in_group * hs
        qg = q[:, lo:lo + width].astype(jnp.bfloat16)               # (R, 128)
        kg = k[:, lo:lo + width].astype(jnp.bfloat16)
        vg = v[:, lo:lo + width].astype(jnp.bfloat16)

        group_outs = []
        for e in range(n_in_group):
            a = e * hs
            qh = qg[:, a:a + hs]                                    # (R, hs)
            kh = kg[:, a:a + hs]
            vh = vg[:, a:a + hs]

            # scores = q @ k^T (scale already folded into Wq); no explicit
            # transpose materialized.
            s = lax.dot_general(qh, kh, (((1,), (1,)), ((), ())),
                                preferred_element_type=jnp.float32)  # (R, R)
            s = s + bias                                            # finite mask
            s = s - jnp.max(s, axis=-1, keepdims=True)
            p = jnp.exp(s)
            p = p * pl.reciprocal(jnp.sum(p, axis=-1, keepdims=True),
                                  approx=True)
            # p -> bf16 before P@V is the intentional (documented) precision loss.
            group_outs.append(
                jnp.dot(p.astype(jnp.bfloat16), vh,
                        preferred_element_type=jnp.float32))        # (R, hs)

        outs.append(group_outs[0] if n_in_group == 1
                    else jnp.concatenate(group_outs, axis=-1))      # (R, 128)

    # Concatenate the 128-wide (vreg-aligned) pair outputs -> (R, C), then the
    # output projection + bias.
    cat = (outs[0] if len(outs) == 1
           else jnp.concatenate(outs, axis=-1)).astype(jnp.bfloat16)
    y = jnp.dot(cat, wp_ref[...],
                preferred_element_type=jnp.float32) + bp_ref[...]
    o_ref[...] = y.astype(o_ref.dtype)


# ---------------------------------------------------------------------------
# Wrapper (no per-call weight glue; only layout plumbing on activations)
# ---------------------------------------------------------------------------
def multi_head_attention(x, wqkv, wp, bp, *, num_heads, head_size):
    """x: (B, T, C); wqkv/wp/bp from prepare_mha_params()."""
    B, T, C = x.shape
    R = B * T

    # Lane-dense (B*T, C) slab; bf16 at the kernel boundary (halves x DMA).
    x2 = x.reshape(R, C).astype(jnp.bfloat16)
    mask_bias = _block_causal_bias(B, T)                           # (R, R) f32

    kernel = functools.partial(mha_fused_kernel, num_heads=num_heads,
                               head_size=head_size)

    out = pl.pallas_call(
        kernel,
        out_shape=jax.ShapeDtypeStruct((R, C), jnp.float32),
        grid_spec=pltpu.PrefetchScalarGridSpec(
            num_scalar_prefetch=0,
            # Whole (tiny) problem in ONE grid step: one weight fetch, no
            # per-step overhead, no duplicated weight DMA across TCs.
            grid=(1,),
            in_specs=[
                pl.BlockSpec((R, C), lambda i: (i, 0)),            # x rows
                pl.BlockSpec((C, 3 * C), lambda i: (0, 0)),        # fused QKV W
                pl.BlockSpec((C, C), lambda i: (0, 0)),            # proj W
                pl.BlockSpec((1, C), lambda i: (0, 0)),            # proj bias
                pl.BlockSpec((R, R), lambda i: (0, 0)),            # mask bias
            ],
            out_specs=pl.BlockSpec((R, C), lambda i: (i, 0)),
        ),
        compiler_params=pltpu.CompilerParams(
            dimension_semantics=("arbitrary",),
            vmem_limit_bytes=32 * 1024 * 1024),
    )(x2, wqkv, wp, bp, mask_bias)

    return out.reshape(B, T, C).astype(x.dtype)


# ---------------------------------------------------------------------------
# Pure-JAX reference (f32) for sanity checking
# ---------------------------------------------------------------------------
def reference(x, wq, wk, wv, w_proj_t, b_proj):
    B, T, C = x.shape
    H, _, hs = wq.shape
    outs = []
    for h in range(H):
        q = x @ wq[h]
        k = x @ wk[h]
        v = x @ wv[h]
        wei = (q @ jnp.swapaxes(k, -2, -1)) * (hs ** -0.5)
        mask = jnp.tril(jnp.ones((T, T), dtype=bool))
        wei = jnp.where(mask, wei, -jnp.inf)
        wei = jax.nn.softmax(wei, axis=-1)
        outs.append(wei @ v)
    cat = jnp.concatenate(outs, axis=-1)
    return cat @ w_proj_t + b_proj


if __name__ == "__main__":
    B, T = 2, 8
    num_heads = 6
    head_size = n_embd // num_heads   # 64

    key = jax.random.PRNGKey(0)
    kx, kq, kk, kv, kpw, kpb = jax.random.split(key, 6)

    x = jax.random.normal(kx, (B, T, n_embd), dtype=jnp.float32)

    # nn.Linear init: U(-1/sqrt(fan_in), 1/sqrt(fan_in)); weights stored
    # pre-transposed ((in, out) so the kernel computes x @ W directly).
    bound = 1.0 / (n_embd ** 0.5)
    wq = jax.random.uniform(kq, (num_heads, n_embd, head_size), jnp.float32,
                            -bound, bound)
    wk = jax.random.uniform(kk, (num_heads, n_embd, head_size), jnp.float32,
                            -bound, bound)
    wv = jax.random.uniform(kv, (num_heads, n_embd, head_size), jnp.float32,
                            -bound, bound)
    w_proj_t = jax.random.uniform(kpw, (n_embd, n_embd), jnp.float32,
                                  -bound, bound)
    b_proj = jax.random.uniform(kpb, (n_embd,), jnp.float32, -bound, bound)

    # One-time weight fusion / bf16 cast / scale folding (review item 2 & 3).
    wqkv, wp, bp = prepare_mha_params(wq, wk, wv, w_proj_t, b_proj)

    mha = jax.jit(functools.partial(multi_head_attention,
                                    num_heads=num_heads, head_size=head_size))
    out = mha(x, wqkv, wp, bp)
    out = jax.block_until_ready(out)

    ref = reference(x, wq, wk, wv, w_proj_t, b_proj)
    assert out.shape == (B, T, n_embd)
    # bf16 MXU inputs with f32 accumulation / f32 softmax -> bf16-level tolerance.
    assert jnp.allclose(out, ref, rtol=3e-2, atol=3e-2), "mismatch vs reference"

    print("KERNEL_OK")
</pallas_src>

<mosaic_0001>
module attributes {stable_mosaic.version = 11 : i64} {
  func.func @mha_fused_kernel(%arg0: i32, %arg1: memref<16x384xbf16, #tpu.memory_space<vmem>>, %arg2: memref<384x1152xbf16, #tpu.memory_space<vmem>>, %arg3: memref<384x384xbf16, #tpu.memory_space<vmem>>, %arg4: memref<1x384xf32, #tpu.memory_space<vmem>>, %arg5: memref<16x16xf32, #tpu.memory_space<vmem>>, %arg6: memref<16x384xf32, #tpu.memory_space<vmem>>) attributes {dimension_semantics = [#tpu.dimension_semantics<arbitrary>], iteration_bounds = array<i64: 1>, scalar_prefetch = 0 : i64, scratch_operands = 0 : i64, tpu.core_type = #tpu.core_type<tc>, window_params = [{transform_indices = @transform_0, window_bounds = array<i64: 16, 384>}, {pipeline_mode = #tpu.pipeline_mode<synchronous>, transform_indices = @transform_1, window_bounds = array<i64: 384, 1152>}, {pipeline_mode = #tpu.pipeline_mode<synchronous>, transform_indices = @transform_2, window_bounds = array<i64: 384, 384>}, {pipeline_mode = #tpu.pipeline_mode<synchronous>, transform_indices = @transform_3, window_bounds = array<i64: 1, 384>}, {pipeline_mode = #tpu.pipeline_mode<synchronous>, transform_indices = @transform_4, window_bounds = array<i64: 16, 16>}, {transform_indices = @transform_5, window_bounds = array<i64: 16, 384>}]} {
    %c0 = arith.constant 0 : index
    %c0_0 = arith.constant 0 : index
    %0 = vector.load %arg1[%c0, %c0_0] : memref<16x384xbf16, #tpu.memory_space<vmem>>, vector<16x384xbf16>
    %c0_1 = arith.constant 0 : index
    %c0_2 = arith.constant 0 : index
    %1 = vector.load %arg2[%c0_1, %c0_2] : memref<384x1152xbf16, #tpu.memory_space<vmem>>, vector<384x1152xbf16>
    %cst = arith.constant dense<0.000000e+00> : vector<16x1152xf32>
    %2 = tpu.matmul %0, %1, %cst {dimension_numbers = #tpu.dot_dimension_numbers<[1], [0], [0], [1], [0, 0, 1, 1], [], []>} : vector<16x384xbf16>, vector<384x1152xbf16>, vector<16x1152xf32> -> vector<16x1152xf32>
    %3 = vector.extract_strided_slice %2 {offsets = [0, 0], sizes = [16, 384], strides = [1, 1]} : vector<16x1152xf32> to vector<16x384xf32>
    %4 = vector.extract_strided_slice %2 {offsets = [0, 384], sizes = [16, 384], strides = [1, 1]} : vector<16x1152xf32> to vector<16x384xf32>
    %5 = vector.extract_strided_slice %2 {offsets = [0, 768], sizes = [16, 384], strides = [1, 1]} : vector<16x1152xf32> to vector<16x384xf32>
    %c0_3 = arith.constant 0 : index
    %c0_4 = arith.constant 0 : index
    %6 = vector.load %arg5[%c0_3, %c0_4] : memref<16x16xf32, #tpu.memory_space<vmem>>, vector<16x16xf32>
    %7 = vector.extract_strided_slice %3 {offsets = [0, 0], sizes = [16, 128], strides = [1, 1]} : vector<16x384xf32> to vector<16x128xf32>
    %8 = arith.truncf %7 : vector<16x128xf32> to vector<16x128xbf16>
    %9 = vector.extract_strided_slice %4 {offsets = [0, 0], sizes = [16, 128], strides = [1, 1]} : vector<16x384xf32> to vector<16x128xf32>
    %10 = arith.truncf %9 : vector<16x128xf32> to vector<16x128xbf16>
    %11 = vector.extract_strided_slice %5 {offsets = [0, 0], sizes = [16, 128], strides = [1, 1]} : vector<16x384xf32> to vector<16x128xf32>
    %12 = arith.truncf %11 : vector<16x128xf32> to vector<16x128xbf16>
    %13 = vector.extract_strided_slice %8 {offsets = [0, 0], sizes = [16, 64], strides = [1, 1]} : vector<16x128xbf16> to vector<16x64xbf16>
    %14 = vector.extract_strided_slice %10 {offsets = [0, 0], sizes = [16, 64], strides = [1, 1]} : vector<16x128xbf16> to vector<16x64xbf16>
    %15 = vector.extract_strided_slice %12 {offsets = [0, 0], sizes = [16, 64], strides = [1, 1]} : vector<16x128xbf16> to vector<16x64xbf16>
    %cst_5 = arith.constant dense<0.000000e+00> : vector<16x16xf32>
    %16 = tpu.matmul %13, %14, %cst_5 {dimension_numbers = #tpu.dot_dimension_numbers<[1], [1], [0], [0], [0, 0, 1, 0], [], []>} : vector<16x64xbf16>, vector<16x64xbf16>, vector<16x16xf32> -> vector<16x16xf32>
    %17 = arith.addf %16, %6 : vector<16x16xf32>
    %cst_6 = arith.constant dense<0xFF800000> : vector<16xf32>
    %18 = vector.multi_reduction <maximumf>, %17, %cst_6 [1] : vector<16x16xf32> to vector<16xf32>
    %19 = vector.shape_cast %18 : vector<16xf32> to vector<16x1xf32>
    %20 = vector.broadcast %19 : vector<16x1xf32> to vector<16x16xf32>
    %21 = arith.subf %17, %20 : vector<16x16xf32>
    %22 = math.exp %21 : vector<16x16xf32>
    %cst_7 = arith.constant dense<0.000000e+00> : vector<16xf32>
    %23 = vector.multi_reduction <add>, %22, %cst_7 [1] : vector<16x16xf32> to vector<16xf32>
    %24 = vector.shape_cast %23 : vector<16xf32> to vector<16x1xf32>
    %25 = tpu.reciprocal %24 {approx = true} : vector<16x1xf32> -> vector<16x1xf32>
    %26 = vector.broadcast %25 : vector<16x1xf32> to vector<16x16xf32>
    %27 = arith.mulf %22, %26 : vector<16x16xf32>
    %28 = arith.truncf %27 : vector<16x16xf32> to vector<16x16xbf16>
    %cst_8 = arith.constant dense<0.000000e+00> : vector<16x64xf32>
    %29 = tpu.matmul %28, %15, %cst_8 {dimension_numbers = #tpu.dot_dimension_numbers<[1], [0], [0], [1], [0, 0, 1, 1], [], []>} : vector<16x16xbf16>, vector<16x64xbf16>, vector<16x64xf32> -> vector<16x64xf32>
    %30 = vector.extract_strided_slice %8 {offsets = [0, 64], sizes = [16, 64], strides = [1, 1]} : vector<16x128xbf16> to vector<16x64xbf16>
    %31 = vector.extract_strided_slice %10 {offsets = [0, 64], sizes = [16, 64], strides = [1, 1]} : vector<16x128xbf16> to vector<16x64xbf16>
    %32 = vector.extract_strided_slice %12 {offsets = [0, 64], sizes = [16, 64], strides = [1, 1]} : vector<16x128xbf16> to vector<16x64xbf16>
    %cst_9 = arith.constant dense<0.000000e+00> : vector<16x16xf32>
    %33 = tpu.matmul %30, %31, %cst_9 {dimension_numbers = #tpu.dot_dimension_numbers<[1], [1], [0], [0], [0, 0, 1, 0], [], []>} : vector<16x64xbf16>, vector<16x64xbf16>, vector<16x16xf32> -> vector<16x16xf32>
    %34 = arith.addf %33, %6 : vector<16x16xf32>
    %cst_10 = arith.constant dense<0xFF800000> : vector<16xf32>
    %35 = vector.multi_reduction <maximumf>, %34, %cst_10 [1] : vector<16x16xf32> to vector<16xf32>
    %36 = vector.shape_cast %35 : vector<16xf32> to vector<16x1xf32>
    %37 = vector.broadcast %36 : vector<16x1xf32> to vector<16x16xf32>
    %38 = arith.subf %34, %37 : vector<16x16xf32>
    %39 = math.exp %38 : vector<16x16xf32>
    %cst_11 = arith.constant dense<0.000000e+00> : vector<16xf32>
    %40 = vector.multi_reduction <add>, %39, %cst_11 [1] : vector<16x16xf32> to vector<16xf32>
    %41 = vector.shape_cast %40 : vector<16xf32> to vector<16x1xf32>
    %42 = tpu.reciprocal %41 {approx = true} : vector<16x1xf32> -> vector<16x1xf32>
    %43 = vector.broadcast %42 : vector<16x1xf32> to vector<16x16xf32>
    %44 = arith.mulf %39, %43 : vector<16x16xf32>
    %45 = arith.truncf %44 : vector<16x16xf32> to vector<16x16xbf16>
    %cst_12 = arith.constant dense<0.000000e+00> : vector<16x64xf32>
    %46 = tpu.matmul %45, %32, %cst_12 {dimension_numbers = #tpu.dot_dimension_numbers<[1], [0], [0], [1], [0, 0, 1, 1], [], []>} : vector<16x16xbf16>, vector<16x64xbf16>, vector<16x64xf32> -> vector<16x64xf32>
    %47 = tpu.concatenate %29, %46 in 1 : vector<16x64xf32>, vector<16x64xf32> -> vector<16x128xf32>
    %48 = vector.extract_strided_slice %3 {offsets = [0, 128], sizes = [16, 128], strides = [1, 1]} : vector<16x384xf32> to vector<16x128xf32>
    %49 = arith.truncf %48 : vector<16x128xf32> to vector<16x128xbf16>
    %50 = vector.extract_strided_slice %4 {offsets = [0, 128], sizes = [16, 128], strides = [1, 1]} : vector<16x384xf32> to vector<16x128xf32>
    %51 = arith.truncf %50 : vector<16x128xf32> to vector<16x128xbf16>
    %52 = vector.extract_strided_slice %5 {offsets = [0, 128], sizes = [16, 128], strides = [1, 1]} : vector<16x384xf32> to vector<16x128xf32>
    %53 = arith.truncf %52 : vector<16x128xf32> to vector<16x128xbf16>
    %54 = vector.extract_strided_slice %49 {offsets = [0, 0], sizes = [16, 64], strides = [1, 1]} : vector<16x128xbf16> to vector<16x64xbf16>
    %55 = vector.extract_strided_slice %51 {offsets = [0, 0], sizes = [16, 64], strides = [1, 1]} : vector<16x128xbf16> to vector<16x64xbf16>
    %56 = vector.extract_strided_slice %53 {offsets = [0, 0], sizes = [16, 64], strides = [1, 1]} : vector<16x128xbf16> to vector<16x64xbf16>
    %cst_13 = arith.constant dense<0.000000e+00> : vector<16x16xf32>
    %57 = tpu.matmul %54, %55, %cst_13 {dimension_numbers = #tpu.dot_dimension_numbers<[1], [1], [0], [0], [0, 0, 1, 0], [], []>} : vector<16x64xbf16>, vector<16x64xbf16>, vector<16x16xf32> -> vector<16x16xf32>
    %58 = arith.addf %57, %6 : vector<16x16xf32>
    %cst_14 = arith.constant dense<0xFF800000> : vector<16xf32>
    %59 = vector.multi_reduction <maximumf>, %58, %cst_14 [1] : vector<16x16xf32> to vector<16xf32>
    %60 = vector.shape_cast %59 : vector<16xf32> to vector<16x1xf32>
    %61 = vector.broadcast %60 : vector<16x1xf32> to vector<16x16xf32>
    %62 = arith.subf %58, %61 : vector<16x16xf32>
    %63 = math.exp %62 : vector<16x16xf32>
    %cst_15 = arith.constant dense<0.000000e+00> : vector<16xf32>
    %64 = vector.multi_reduction <add>, %63, %cst_15 [1] : vector<16x16xf32> to vector<16xf32>
    %65 = vector.shape_cast %64 : vector<16xf32> to vector<16x1xf32>
    %66 = tpu.reciprocal %65 {approx = true} : vector<16x1xf32> -> vector<16x1xf32>
    %67 = vector.broadcast %66 : vector<16x1xf32> to vector<16x16xf32>
    %68 = arith.mulf %63, %67 : vector<16x16xf32>
    %69 = arith.truncf %68 : vector<16x16xf32> to vector<16x16xbf16>
    %cst_16 = arith.constant dense<0.000000e+00> : vector<16x64xf32>
    %70 = tpu.matmul %69, %56, %cst_16 {dimension_numbers = #tpu.dot_dimension_numbers<[1], [0], [0], [1], [0, 0, 1, 1], [], []>} : vector<16x16xbf16>, vector<16x64xbf16>, vector<16x64xf32> -> vector<16x64xf32>
    %71 = vector.extract_strided_slice %49 {offsets = [0, 64], sizes = [16, 64], strides = [1, 1]} : vector<16x128xbf16> to vector<16x64xbf16>
    %72 = vector.extract_strided_slice %51 {offsets = [0, 64], sizes = [16, 64], strides = [1, 1]} : vector<16x128xbf16> to vector<16x64xbf16>
    %73 = vector.extract_strided_slice %53 {offsets = [0, 64], sizes = [16, 64], strides = [1, 1]} : vector<16x128xbf16> to vector<16x64xbf16>
    %cst_17 = arith.constant dense<0.000000e+00> : vector<16x16xf32>
    %74 = tpu.matmul %71, %72, %cst_17 {dimension_numbers = #tpu.dot_dimension_numbers<[1], [1], [0], [0], [0, 0, 1, 0], [], []>} : vector<16x64xbf16>, vector<16x64xbf16>, vector<16x16xf32> -> vector<16x16xf32>
    %75 = arith.addf %74, %6 : vector<16x16xf32>
    %cst_18 = arith.constant dense<0xFF800000> : vector<16xf32>
    %76 = vector.multi_reduction <maximumf>, %75, %cst_18 [1] : vector<16x16xf32> to vector<16xf32>
    %77 = vector.shape_cast %76 : vector<16xf32> to vector<16x1xf32>
    %78 = vector.broadcast %77 : vector<16x1xf32> to vector<16x16xf32>
    %79 = arith.subf %75, %78 : vector<16x16xf32>
    %80 = math.exp %79 : vector<16x16xf32>
    %cst_19 = arith.constant dense<0.000000e+00> : vector<16xf32>
    %81 = vector.multi_reduction <add>, %80, %cst_19 [1] : vector<16x16xf32> to vector<16xf32>
    %82 = vector.shape_cast %81 : vector<16xf32> to vector<16x1xf32>
    %83 = tpu.reciprocal %82 {approx = true} : vector<16x1xf32> -> vector<16x1xf32>
    %84 = vector.broadcast %83 : vector<16x1xf32> to vector<16x16xf32>
    %85 = arith.mulf %80, %84 : vector<16x16xf32>
    %86 = arith.truncf %85 : vector<16x16xf32> to vector<16x16xbf16>
    %cst_20 = arith.constant dense<0.000000e+00> : vector<16x64xf32>
    %87 = tpu.matmul %86, %73, %cst_20 {dimension_numbers = #tpu.dot_dimension_numbers<[1], [0], [0], [1], [0, 0, 1, 1], [], []>} : vector<16x16xbf16>, vector<16x64xbf16>, vector<16x64xf32> -> vector<16x64xf32>
    %88 = tpu.concatenate %70, %87 in 1 : vector<16x64xf32>, vector<16x64xf32> -> vector<16x128xf32>
    %89 = vector.extract_strided_slice %3 {offsets = [0, 256], sizes = [16, 128], strides = [1, 1]} : vector<16x384xf32> to vector<16x128xf32>
    %90 = arith.truncf %89 : vector<16x128xf32> to vector<16x128xbf16>
    %91 = vector.extract_strided_slice %4 {offsets = [0, 256], sizes = [16, 128], strides = [1, 1]} : vector<16x384xf32> to vector<16x128xf32>
    %92 = arith.truncf %91 : vector<16x128xf32> to vector<16x128xbf16>
    %93 = vector.extract_strided_slice %5 {offsets = [0, 256], sizes = [16, 128], strides = [1, 1]} : vector<16x384xf32> to vector<16x128xf32>
    %94 = arith.truncf %93 : vector<16x128xf32> to vector<16x128xbf16>
    %95 = vector.extract_strided_slice %90 {offsets = [0, 0], sizes = [16, 64], strides = [1, 1]} : vector<16x128xbf16> to vector<16x64xbf16>
    %96 = vector.extract_strided_slice %92 {offsets = [0, 0], sizes = [16, 64], strides = [1, 1]} : vector<16x128xbf16> to vector<16x64xbf16>
    %97 = vector.extract_strided_slice %94 {offsets = [0, 0], sizes = [16, 64], strides = [1, 1]} : vector<16x128xbf16> to vector<16x64xbf16>
    %cst_21 = arith.constant dense<0.000000e+00> : vector<16x16xf32>
    %98 = tpu.matmul %95, %96, %cst_21 {dimension_numbers = #tpu.dot_dimension_numbers<[1], [1], [0], [0], [0, 0, 1, 0], [], []>} : vector<16x64xbf16>, vector<16x64xbf16>, vector<16x16xf32> -> vector<16x16xf32>
    %99 = arith.addf %98, %6 : vector<16x16xf32>
    %cst_22 = arith.constant dense<0xFF800000> : vector<16xf32>
    %100 = vector.multi_reduction <maximumf>, %99, %cst_22 [1] : vector<16x16xf32> to vector<16xf32>
    %101 = vector.shape_cast %100 : vector<16xf32> to vector<16x1xf32>
    %102 = vector.broadcast %101 : vector<16x1xf32> to vector<16x16xf32>
    %103 = arith.subf %99, %102 : vector<16x16xf32>
    %104 = math.exp %103 : vector<16x16xf32>
    %cst_23 = arith.constant dense<0.000000e+00> : vector<16xf32>
    %105 = vector.multi_reduction <add>, %104, %cst_23 [1] : vector<16x16xf32> to vector<16xf32>
    %106 = vector.shape_cast %105 : vector<16xf32> to vector<16x1xf32>
    %107 = tpu.reciprocal %106 {approx = true} : vector<16x1xf32> -> vector<16x1xf32>
    %108 = vector.broadcast %107 : vector<16x1xf32> to vector<16x16xf32>
    %109 = arith.mulf %104, %108 : vector<16x16xf32>
    %110 = arith.truncf %109 : vector<16x16xf32> to vector<16x16xbf16>
    %cst_24 = arith.constant dense<0.000000e+00> : vector<16x64xf32>
    %111 = tpu.matmul %110, %97, %cst_24 {dimension_numbers = #tpu.dot_dimension_numbers<[1], [0], [0], [1], [0, 0, 1, 1], [], []>} : vector<16x16xbf16>, vector<16x64xbf16>, vector<16x64xf32> -> vector<16x64xf32>
    %112 = vector.extract_strided_slice %90 {offsets = [0, 64], sizes = [16, 64], strides = [1, 1]} : vector<16x128xbf16> to vector<16x64xbf16>
    %113 = vector.extract_strided_slice %92 {offsets = [0, 64], sizes = [16, 64], strides = [1, 1]} : vector<16x128xbf16> to vector<16x64xbf16>
    %114 = vector.extract_strided_slice %94 {offsets = [0, 64], sizes = [16, 64], strides = [1, 1]} : vector<16x128xbf16> to vector<16x64xbf16>
    %cst_25 = arith.constant dense<0.000000e+00> : vector<16x16xf32>
    %115 = tpu.matmul %112, %113, %cst_25 {dimension_numbers = #tpu.dot_dimension_numbers<[1], [1], [0], [0], [0, 0, 1, 0], [], []>} : vector<16x64xbf16>, vector<16x64xbf16>, vector<16x16xf32> -> vector<16x16xf32>
    %116 = arith.addf %115, %6 : vector<16x16xf32>
    %cst_26 = arith.constant dense<0xFF800000> : vector<16xf32>
    %117 = vector.multi_reduction <maximumf>, %116, %cst_26 [1] : vector<16x16xf32> to vector<16xf32>
    %118 = vector.shape_cast %117 : vector<16xf32> to vector<16x1xf32>
    %119 = vector.broadcast %118 : vector<16x1xf32> to vector<16x16xf32>
    %120 = arith.subf %116, %119 : vector<16x16xf32>
    %121 = math.exp %120 : vector<16x16xf32>
    %cst_27 = arith.constant dense<0.000000e+00> : vector<16xf32>
    %122 = vector.multi_reduction <add>, %121, %cst_27 [1] : vector<16x16xf32> to vector<16xf32>
    %123 = vector.shape_cast %122 : vector<16xf32> to vector<16x1xf32>
    %124 = tpu.reciprocal %123 {approx = true} : vector<16x1xf32> -> vector<16x1xf32>
    %125 = vector.broadcast %124 : vector<16x1xf32> to vector<16x16xf32>
    %126 = arith.mulf %121, %125 : vector<16x16xf32>
    %127 = arith.truncf %126 : vector<16x16xf32> to vector<16x16xbf16>
    %cst_28 = arith.constant dense<0.000000e+00> : vector<16x64xf32>
    %128 = tpu.matmul %127, %114, %cst_28 {dimension_numbers = #tpu.dot_dimension_numbers<[1], [0], [0], [1], [0, 0, 1, 1], [], []>} : vector<16x16xbf16>, vector<16x64xbf16>, vector<16x64xf32> -> vector<16x64xf32>
    %129 = tpu.concatenate %111, %128 in 1 : vector<16x64xf32>, vector<16x64xf32> -> vector<16x128xf32>
    %130 = tpu.concatenate %47, %88, %129 in 1 : vector<16x128xf32>, vector<16x128xf32>, vector<16x128xf32> -> vector<16x384xf32>
    %131 = arith.truncf %130 : vector<16x384xf32> to vector<16x384xbf16>
    %c0_29 = arith.constant 0 : index
    %c0_30 = arith.constant 0 : index
    %132 = vector.load %arg3[%c0_29, %c0_30] : memref<384x384xbf16, #tpu.memory_space<vmem>>, vector<384x384xbf16>
    %cst_31 = arith.constant dense<0.000000e+00> : vector<16x384xf32>
    %133 = tpu.matmul %131, %132, %cst_31 {dimension_numbers = #tpu.dot_dimension_numbers<[1], [0], [0], [1], [0, 0, 1, 1], [], []>} : vector<16x384xbf16>, vector<384x384xbf16>, vector<16x384xf32> -> vector<16x384xf32>
    %c0_32 = arith.constant 0 : index
    %c0_33 = arith.constant 0 : index
    %134 = vector.load %arg4[%c0_32, %c0_33] : memref<1x384xf32, #tpu.memory_space<vmem>>, vector<1x384xf32>
    %135 = vector.broadcast %134 : vector<1x384xf32> to vector<16x384xf32>
    %136 = arith.addf %133, %135 : vector<16x384xf32>
    %c0_34 = arith.constant 0 : index
    %c0_35 = arith.constant 0 : index
    %137 = vector.load %arg6[%c0_34, %c0_35] : memref<16x384xf32, #tpu.memory_space<vmem>>, vector<16x384xf32>
    tpu.vector_store %arg6[%c0_34, %c0_35], %136 {strides = array<i32>} : memref<16x384xf32, #tpu.memory_space<vmem>>, vector<16x384xf32>,
    return
  }
  func.func @transform_0(%arg0: i32) -> (i32, i32) {
    %c0_i32 = arith.constant 0 : i32
    %c0_i32_0 = arith.constant 0 : i32
    return %arg0, %c0_i32 : i32, i32
  }
  func.func @transform_1(%arg0: i32) -> (i32, i32) {
    %c0_i32 = arith.constant 0 : i32
    %c0_i32_0 = arith.constant 0 : i32
    %c0_i32_1 = arith.constant 0 : i32
    return %c0_i32, %c0_i32_0 : i32, i32
  }
  func.func @transform_2(%arg0: i32) -> (i32, i32) {
    %c0_i32 = arith.constant 0 : i32
    %c0_i32_0 = arith.constant 0 : i32
    %c0_i32_1 = arith.constant 0 : i32
    return %c0_i32, %c0_i32_0 : i32, i32
  }
  func.func @transform_3(%arg0: i32) -> (i32, i32) {
    %c0_i32 = arith.constant 0 : i32
    %c0_i32_0 = arith.constant 0 : i32
    %c0_i32_1 = arith.constant 0 : i32
    return %c0_i32, %c0_i32_0 : i32, i32
  }
  func.func @transform_4(%arg0: i32) -> (i32, i32) {
    %c0_i32 = arith.constant 0 : i32
    %c0_i32_0 = arith.constant 0 : i32
    %c0_i32_1 = arith.constant 0 : i32
    return %c0_i32, %c0_i32_0 : i32, i32
  }
  func.func @transform_5(%arg0: i32) -> (i32, i32) {
    %c0_i32 = arith.constant 0 : i32
    %c0_i32_0 = arith.constant 0 : i32
    return %arg0, %c0_i32 : i32, i32
  }
}

</mosaic_0001>

<bundles_post_ra>
// kernel: multi_head_attention.1
= control target key start
LH: loop header
LB: loop body
LE: loop exit
PB: predicated region body
PF: predicated region fallthrough
CT: control target
= control target key end

     0   :  { %10 = vsyncpa [#allocation3], 0  ;;  %s4725_s0 = inlined_call_operand.vmem [shape: bf16[16,384], index: 0, kind: input, shape index: {}]   ;;  %s4726_s1 = inlined_call_operand.hbm [shape: bf16[384,1152], index: 1, kind: input, shape index: {}]   ;;  %s4727_s2 = inlined_call_operand.hbm [shape: bf16[384,384], index: 2, kind: input, shape index: {}]   ;;  %s4728_s3 = inlined_call_operand.vmem [shape: f32[1,384], index: 3, kind: input, shape index: {}]   ;;  %s4729_s4 = inlined_call_operand.vmem [shape: f32[16,16], index: 4, kind: input, shape index: {}]   ;;  %s4730_s5 = inlined_call_operand.hbm [shape: f32[16,384], index: 5, kind: output, shape index: {}]  }
   0x1   :  { %11 = vsyncpa [#allocation6], 0 }
   0x2   :  { %12 = vsyncpa [#allocation4], 0  ;;  %s4376_s18 = smov [#allocation2]   ;;  %s4304_s22 = scalar_lea.hbm %s4726_s1, 27648 }
   0x3   :  { %s20_s19 = sshll.u32 %s4376_s18, 4  ;;  %p4305_p0 = scmp.ne.s32.totalorder %s4726_s1, %s4304_s22  ;;  %s21_s19 = int_to_ptr.vmem [resolvable:$true] %s20_s19 }
   0x4   :  { %p4308_p1 = scmp.lt.u32.totalorder %s4304_s22, %s4726_s1 }
   0x6   :  { %p4310_p2 = pnand %p4308_p1, %p4305_p0 }
   0x8   :  { %4313 = shalt.err (!%p4310_p2)
}
   0x9   :  { %s4314_s27 = scalar_lea.vmem %s21_s19, 27648  ;;  %p4319_p4 = scmp.lt.s32.totalorder %s21_s19, %s21_s19 }
   0xa   :  { %p4315_p3 = scmp.ne.s32.totalorder %s21_s19, %s4314_s27  ;;  %p4320_p5 = scmp.lt.s32.totalorder %s4314_s27, %s4314_s27 }
   0xc   :  { %p4321_p6 = por %p4320_p5, %p4319_p4 }
   0xe   :  { %p4322_p7 = pnand %p4321_p6, %p4315_p3 }
  0x10   :  { %4325 = shalt.err (!%p4322_p7)
}
  0x11   :  { %s4377_s28 = smov 576   ;;  %s4378_s29 = smov 36  }
  0x12   :  { %26 = dma.hbm_to_vmem [thread:$0]  %s4726_s1, 27648, %s21_s19, [#allocation3], %s4377_s28, %s4377_s28, %s4378_s29  }
  0x13   :  { %s4379_s7 = smov [#allocation5]   ;;  %s4326_s11 = scalar_lea.hbm %s4727_s2, 9216 }
  0x14   :  { %s32_s8 = sshll.u32 %s4379_s7, 4  ;;  %p4327_p8 = scmp.ne.s32.totalorder %s4727_s2, %s4326_s11  ;;  %s33_s8 = int_to_ptr.vmem [resolvable:$true] %s32_s8 }
  0x15   :  { %p4330_p9 = scmp.lt.u32.totalorder %s4326_s11, %s4727_s2 }
  0x17   :  { %p4332_p10 = pnand %p4330_p9, %p4327_p8 }
  0x19   :  { %4335 = shalt.err (!%p4332_p10)
}
  0x1a   :  { %s4336_s16 = scalar_lea.vmem %s33_s8, 9216  ;;  %p4341_p12 = scmp.lt.s32.totalorder %s33_s8, %s33_s8 }
  0x1b   :  { %p4337_p11 = scmp.ne.s32.totalorder %s33_s8, %s4336_s16  ;;  %p4342_p13 = scmp.lt.s32.totalorder %s4336_s16, %s4336_s16 }
  0x1d   :  { %p4343_p0 = por %p4342_p13, %p4341_p12 }
  0x1f   :  { %p4344_p1 = pnand %p4343_p0, %p4337_p11 }
  0x21   :  { %4347 = shalt.err (!%p4344_p1)
}
  0x22   :  { %s4380_s1 = smov 192   ;;  %s4381_s17 = smov 12  }
  0x23   :  { %38 = dma.hbm_to_vmem [thread:$0]  %s4727_s2, 9216, %s33_s8, [#allocation6], %s4380_s1, %s4380_s1, %s4381_s17  }
  0x24   :  { %4370 = dma.done.wait [#allocation3], 27648  }
  0x25   :  { %4371 = vsyncadd [#allocation3], 4294939648 }
  0x26   :  { %4372 = dma.done.wait [#allocation6], 9216  }
  0x27   :  { %4373 = vsyncadd [#allocation6], 4294958080  ;;  %v3842_v0 = vld [vmem:[#allocation2 + $0x4] ss:$36 sps:$4 sm:$0xff]   ;;  %v3844_v1 = vld [vmem:[#allocation2 + $0xc] ss:$36 sps:$4 sm:$0xff]  }
  0x28   :  { %1414 = vmatprep.subr.bf16.mxu0 %v3842_v0  ;;  %v3846_v2 = vld [vmem:[#allocation2] ss:$36 sps:$4 sm:$0xff]   ;;  %v3847_v3 = vld [vmem:[#allocation2 + $0x8] ss:$36 sps:$4 sm:$0xff]   ;;  %1500 = vmatprep.subr.bf16.mxu1 %v3844_v1  ;;  %v3850_v5 = vld [vmem:[#allocation2 + $0x54] ss:$36 sps:$4 sm:$0xff]  }
  0x29   :  { %v3848_v4 = vld [vmem:[#allocation2 + $0x4c] ss:$36 sps:$4 sm:$0xff]   ;;  %1415 = vmatpush1.bf16.msra.mxu0 %v3846_v2  ;;  %1501 = vmatpush1.bf16.msra.mxu1 %v3847_v3  ;;  %v3854_v8 = vld [vmem:[#allocation2 + $0x94] ss:$36 sps:$4 sm:$0xff]   ;;  %v3856_v9 = vld [vmem:[#allocation2 + $0x9c] ss:$36 sps:$4 sm:$0xff]  }
  0x2a   :  { %v3852_v6 = vld [vmem:[#allocation2 + $0x48] ss:$36 sps:$4 sm:$0xff]   ;;  %1416 = vmatprep.subr.bf16.mxu0 %v3848_v4  ;;  %v3853_v7 = vld [vmem:[#allocation2 + $0x50] ss:$36 sps:$4 sm:$0xff]   ;;  %1502 = vmatprep.subr.bf16.mxu1 %v3850_v5  ;;  %v3859_v11 = vld [vmem:[#allocation2 + $0x98] ss:$36 sps:$4 sm:$0xff]  }
  0x2b   :  { %v3858_v10 = vld [vmem:[#allocation2 + $0x90] ss:$36 sps:$4 sm:$0xff]   ;;  %v3860_v12 = vld [vmem:[#allocation2 + $0xdc] ss:$36 sps:$4 sm:$0xff]   ;;  %v3862_v13 = vld [vmem:[#allocation2 + $0xe4] ss:$36 sps:$4 sm:$0xff]  }
  0x2c   :  { %v3864_v14 = vld [vmem:[#allocation2 + $0xd8] ss:$36 sps:$4 sm:$0xff]   ;;  %v3865_v15 = vld [vmem:[#allocation2 + $0xe0] ss:$36 sps:$4 sm:$0xff]   ;;  %v3868_v17 = vld [vmem:[#allocation2 + $0x12c] ss:$36 sps:$4 sm:$0xff]  }
  0x2d   :  { %1417 = vmatpush1.bf16.msra.mxu0 %v3852_v6  ;;  %1503 = vmatpush1.bf16.msra.mxu1 %v3853_v7  ;;  %v3866_v16 = vld [vmem:[#allocation2 + $0x124] ss:$36 sps:$4 sm:$0xff]   ;;  %v3872_v20 = vld [vmem:[#allocation2 + $0x16c] ss:$36 sps:$4 sm:$0xff]   ;;  %v3874_v21 = vld [vmem:[#allocation2 + $0x174] ss:$36 sps:$4 sm:$0xff]  }
  0x2e   :  { %1418 = vmatprep.subr.bf16.mxu0 %v3854_v8  ;;  %1504 = vmatprep.subr.bf16.mxu1 %v3856_v9  ;;  %v3870_v18 = vld [vmem:[#allocation2 + $0x120] ss:$36 sps:$4 sm:$0xff]   ;;  %v3871_v19 = vld [vmem:[#allocation2 + $0x128] ss:$36 sps:$4 sm:$0xff]   ;;  %v3877_v23 = vld [vmem:[#allocation2 + $0x170] ss:$36 sps:$4 sm:$0xff]  }
  0x2f   :  { %v3876_v22 = vld [vmem:[#allocation2 + $0x168] ss:$36 sps:$4 sm:$0xff]   ;;  %v3878_v24 = vld [vmem:[#allocation2 + $0x1b4] ss:$36 sps:$4 sm:$0xff]   ;;  %v3880_v25 = vld [vmem:[#allocation2 + $0x1bc] ss:$36 sps:$4 sm:$0xff]  }
  0x30   :  { %v3882_v26 = vld [vmem:[#allocation2 + $0x1b0] ss:$36 sps:$4 sm:$0xff]   ;;  %v3883_v27 = vld [vmem:[#allocation2 + $0x1b8] ss:$36 sps:$4 sm:$0xff]   ;;  %v3886_v29 = vld [vmem:[#allocation2 + $0x204] ss:$36 sps:$4 sm:$0xff]  }
  0x31   :  { %1419 = vmatpush1.bf16.msra.mxu0 %v3858_v10  ;;  %1505 = vmatpush1.bf16.msra.mxu1 %v3859_v11  ;;  %v3884_v28 = vld [vmem:[#allocation2 + $0x1fc] ss:$36 sps:$4 sm:$0xff]   ;;  %v3890_v32 = vld [vmem:[#allocation2 + $0x244] ss:$36 sps:$4 sm:$0xff]   ;;  %v3892_v33 = vld [vmem:[#allocation2 + $0x24c] ss:$36 sps:$4 sm:$0xff]  }
  0x32   :  { %1420 = vmatprep.subr.bf16.mxu0 %v3860_v12  ;;  %1506 = vmatprep.subr.bf16.mxu1 %v3862_v13  ;;  %v3888_v30 = vld [vmem:[#allocation2 + $0x1f8] ss:$36 sps:$4 sm:$0xff]   ;;  %v3889_v31 = vld [vmem:[#allocation2 + $0x200] ss:$36 sps:$4 sm:$0xff]   ;;  %v3895_v35 = vld [vmem:[#allocation2 + $0x248] ss:$36 sps:$4 sm:$0xff]  }
  0x33   :  { %v3894_v34 = vld [vmem:[#allocation2 + $0x240] ss:$36 sps:$4 sm:$0xff]   ;;  %v3896_v36 = vld [vmem:[#allocation2 + $0x28c] ss:$36 sps:$4 sm:$0xff]   ;;  %v3898_v37 = vld [vmem:[#allocation2 + $0x294] ss:$36 sps:$4 sm:$0xff]  }
  0x34   :  { %v3900_v38 = vld [vmem:[#allocation2 + $0x288] ss:$36 sps:$4 sm:$0xff]   ;;  %v3901_v39 = vld [vmem:[#allocation2 + $0x290] ss:$36 sps:$4 sm:$0xff]   ;;  %v3904_v41 = vld [vmem:[#allocation2 + $0x2dc] ss:$36 sps:$4 sm:$0xff]  }
  0x35   :  { %1421 = vmatpush1.bf16.msra.mxu0 %v3864_v14  ;;  %1507 = vmatpush1.bf16.msra.mxu1 %v3865_v15  ;;  %v3902_v40 = vld [vmem:[#allocation2 + $0x2d4] ss:$36 sps:$4 sm:$0xff]   ;;  %v3908_v44 = vld [vmem:[#allocation2 + $0x31c] ss:$36 sps:$4 sm:$0xff]   ;;  %v3910_v45 = vld [vmem:[#allocation2 + $0x324] ss:$36 sps:$4 sm:$0xff]  }
  0x36   :  { %1422 = vmatprep.subr.bf16.mxu0 %v3866_v16  ;;  %1508 = vmatprep.subr.bf16.mxu1 %v3868_v17  ;;  %v3906_v42 = vld [vmem:[#allocation2 + $0x2d0] ss:$36 sps:$4 sm:$0xff]   ;;  %v3907_v43 = vld [vmem:[#allocation2 + $0x2d8] ss:$36 sps:$4 sm:$0xff]   ;;  %v3913_v48 = vld [vmem:[#allocation2 + $0x320] ss:$36 sps:$4 sm:$0xff]  }
  0x37   :  { %v3912_v46 = vld [vmem:[#allocation2 + $0x318] ss:$36 sps:$4 sm:$0xff]   ;;  %v3914_v49 = vld [vmem:[#allocation2 + $0x364] ss:$36 sps:$4 sm:$0xff]   ;;  %v3916_v50 = vld [vmem:[#allocation2 + $0x36c] ss:$36 sps:$4 sm:$0xff]  }
  0x38   :  { %v4446_v47 = vld [vmem:[%s4725_s0 + $0x4] ss:$12 sps:$4 sm:$0xff]   ;;  %v3918_v51 = vld [vmem:[#allocation2 + $0x360] ss:$36 sps:$4 sm:$0xff]   ;;  %v3925_v56 = vld [vmem:[#allocation2 + $0x3b0] ss:$36 sps:$4 sm:$0xff]  }
  0x39   :  { %1423 = vmatpush1.bf16.msra.mxu0 %v3870_v18  ;;  %1509 = vmatpush1.bf16.msra.mxu1 %v3871_v19  ;;  %v3919_v52 = vld [vmem:[#allocation2 + $0x368] ss:$36 sps:$4 sm:$0xff]   ;;  %v3922_v54 = vld [vmem:[#allocation2 + $0x3b4] ss:$36 sps:$4 sm:$0xff]   ;;  %v3928_v58 = vld [vmem:[#allocation2 + $0x3fc] ss:$36 sps:$4 sm:$0xff]  }
  0x3a   :  { %1424 = vmatprep.subr.bf16.mxu0 %v3872_v20  ;;  %1510 = vmatprep.subr.bf16.mxu1 %v3874_v21  ;;  %v3920_v53 = vld [vmem:[#allocation2 + $0x3ac] ss:$36 sps:$4 sm:$0xff]   ;;  %v3926_v57 = vld [vmem:[#allocation2 + $0x3f4] ss:$36 sps:$4 sm:$0xff]   ;;  %v3932_v61 = vld [vmem:[#allocation2 + $0x43c] ss:$36 sps:$4 sm:$0xff]  }
  0x3b   :  { %1446 = vmatprep.mubr.bf16.mxu0 %v4446_v47  ;;  %1532 = vmatprep.mubr.bf16.mxu1 %v4446_v47  ;;  %v3924_v55 = vld [vmem:[#allocation2 + $0x3a8] ss:$36 sps:$4 sm:$0xff]   ;;  %v3930_v59 = vld [vmem:[#allocation2 + $0x3f0] ss:$36 sps:$4 sm:$0xff]   ;;  %v3931_v60 = vld [vmem:[#allocation2 + $0x3f8] ss:$36 sps:$4 sm:$0xff]  }
  0x3c   :  { %v3934_v62 = vld [vmem:[#allocation2 + $0x444] ss:$36 sps:$4 sm:$0xff]   ;;  %v3936_v63 = vld [vmem:[#allocation2 + $0x438] ss:$36 sps:$4 sm:$0xff]   ;;  %v3945_v2 = vld [vmem:[#allocation2 + $0x48c] ss:$36 sps:$4 sm:$0xff]  }
  0x3d   :  { %1425 = vmatpush1.bf16.msra.mxu0 %v3876_v22  ;;  %1511 = vmatpush1.bf16.msra.mxu1 %v3877_v23  ;;  %v3937_v0 = vld [vmem:[#allocation2 + $0x440] ss:$36 sps:$4 sm:$0xff]   ;;  %v3943_v4 = vld [vmem:[#allocation2 + $0x488] ss:$36 sps:$4 sm:$0xff]   ;;  %v3952_v7 = vld [vmem:[#allocation2 + $0x4d4] ss:$36 sps:$4 sm:$0xff]  }
  0x3e   :  { %1426 = vmatprep.subr.bf16.mxu0 %v3878_v24  ;;  %1512 = vmatprep.subr.bf16.mxu1 %v3880_v25  ;;  %v3942_v1 = vld [vmem:[#allocation2 + $0x484] ss:$36 sps:$4 sm:$0xff]   ;;  %v3949_v6 = vld [vmem:[#allocation2 + $0x4cc] ss:$36 sps:$4 sm:$0xff]   ;;  %v3955_v10 = vld [vmem:[#allocation2 + $0x514] ss:$36 sps:$4 sm:$0xff]  }
  0x3f   :  { %v3940_v3 = vld [vmem:[#allocation2 + $0x480] ss:$36 sps:$4 sm:$0xff]   ;;  %v4453_v5 = vld [vmem:[%s4725_s0] ss:$12 sps:$4 sm:$0xff]   ;;  %v4382_v12 = vmov 0   ;;  %vm4384_vm0 = vmmov 0  }
  0x40   :  { %v3947_v8 = vld [vmem:[#allocation2 + $0x4c8] ss:$36 sps:$4 sm:$0xff]   ;;  %v3950_v9 = vld [vmem:[#allocation2 + $0x4d0] ss:$36 sps:$4 sm:$0xff]   ;;  %v3958_v11 = vld [vmem:[#allocation2 + $0x51c] ss:$36 sps:$4 sm:$0xff]  }
  0x41   :  { %1427 = vmatpush1.bf16.msra.mxu0 %v3882_v26  ;;  %1513 = vmatpush1.bf16.msra.mxu1 %v3883_v27  ;;  %v3953_v13 = vld [vmem:[#allocation2 + $0x510] ss:$36 sps:$4 sm:$0xff]   ;;  %v3956_v14 = vld [vmem:[#allocation2 + $0x518] ss:$36 sps:$4 sm:$0xff]   ;;  %v3964_v16 = vld [vmem:[#allocation2 + $0x564] ss:$36 sps:$4 sm:$0xff]  }
  0x42   :  { %1428 = vmatprep.subr.bf16.mxu0 %v3884_v28  ;;  %1514 = vmatprep.subr.bf16.mxu1 %v3886_v29  ;;  %v3961_v15 = vld [vmem:[#allocation2 + $0x55c] ss:$36 sps:$4 sm:$0xff]   ;;  %v3967_v19 = vld [vmem:[#allocation2 + $0x5a4] ss:$36 sps:$4 sm:$0xff]   ;;  %v3970_v20 = vld [vmem:[#allocation2 + $0x5ac] ss:$36 sps:$4 sm:$0xff]  }
  0x43   :  { %v3959_v17 = vld [vmem:[#allocation2 + $0x558] ss:$36 sps:$4 sm:$0xff]   ;;  %v3962_v18 = vld [vmem:[#allocation2 + $0x560] ss:$36 sps:$4 sm:$0xff]   ;;  %v3968_v22 = vld [vmem:[#allocation2 + $0x5a8] ss:$36 sps:$4 sm:$0xff]  }
  0x44   :  { %v3965_v21 = vld [vmem:[#allocation2 + $0x5a0] ss:$36 sps:$4 sm:$0xff]   ;;  %v3973_v23 = vld [vmem:[#allocation2 + $0x5ec] ss:$36 sps:$4 sm:$0xff]   ;;  %v3976_v24 = vld [vmem:[#allocation2 + $0x5f4] ss:$36 sps:$4 sm:$0xff]  }
  0x45   :  { %1429 = vmatpush1.bf16.msra.mxu0 %v3888_v30  ;;  %1515 = vmatpush1.bf16.msra.mxu1 %v3889_v31  ;;  %v3971_v25 = vld [vmem:[#allocation2 + $0x5e8] ss:$36 sps:$4 sm:$0xff]   ;;  %v3974_v26 = vld [vmem:[#allocation2 + $0x5f0] ss:$36 sps:$4 sm:$0xff]   ;;  %v3982_v28 = vld [vmem:[#allocation2 + $0x63c] ss:$36 sps:$4 sm:$0xff]  }
  0x46   :  { %1430 = vmatprep.subr.bf16.mxu0 %v3890_v32  ;;  %1516 = vmatprep.subr.bf16.mxu1 %v3892_v33  ;;  %v3979_v27 = vld [vmem:[#allocation2 + $0x634] ss:$36 sps:$4 sm:$0xff]   ;;  %v3985_v31 = vld [vmem:[#allocation2 + $0x67c] ss:$36 sps:$4 sm:$0xff]   ;;  %v3988_v32 = vld [vmem:[#allocation2 + $0x684] ss:$36 sps:$4 sm:$0xff]  }
  0x47   :  { %v3977_v29 = vld [vmem:[#allocation2 + $0x630] ss:$36 sps:$4 sm:$0xff]   ;;  %v3980_v30 = vld [vmem:[#allocation2 + $0x638] ss:$36 sps:$4 sm:$0xff]   ;;  %vm1845_vm1 = vcmask 523264   ;;  %vm1893_vm2 = vcmask 130048  }
  0x48   :  { %v3983_v33 = vld [vmem:[#allocation2 + $0x678] ss:$36 sps:$4 sm:$0xff]   ;;  %s4385_s7 = smov 64   ;;  %s4386_s9 = smov [#allocation7]  }
  0x49   :  { %1431 = vmatpush1.bf16.msra.mxu0 %v3894_v34  ;;  %1517 = vmatpush1.bf16.msra.mxu1 %v3895_v35  ;;  %v3986_v34 = vld [vmem:[#allocation2 + $0x680] ss:$36 sps:$4 sm:$0xff]   ;;  %v3992_v35 = vld [vmem:[#allocation2 + $0x14] ss:$36 sps:$4 sm:$0xff]   ;;  %s3276_s10 = sshll.u32 %s4386_s9, 4  ;;  %s3277_s10 = int_to_ptr.vmem [resolvable:$true] %s3276_s10 }
  0x4a   :  { %1432 = vmatprep.subr.bf16.mxu0 %v3896_v36  ;;  %1518 = vmatprep.subr.bf16.mxu1 %v3898_v37  ;;  %v4031_v36 = vld [vmem:[#allocation2 + $0x1c] ss:$36 sps:$4 sm:$0xff]   ;;  %p4353_p3 = scmp.lt.s32.totalorder %s3277_s10, %s3277_s10 }
  0x4b   :  { %v4462_v37 = vld [vmem:[%s4725_s0 + $0x8] ss:$12 sps:$4 sm:$0xff]  }
  0x4d   :  { %1433 = vmatpush1.bf16.msra.mxu0 %v3900_v38  ;;  %1519 = vmatpush1.bf16.msra.mxu1 %v3901_v39  ;;  %v3990_v38 = vld [vmem:[#allocation2 + $0x10] ss:$36 sps:$4 sm:$0xff]   ;;  %v3995_v39 = vld [vmem:[#allocation2 + $0x5c] ss:$36 sps:$4 sm:$0xff]  }
  0x4e   :  { %1434 = vmatprep.subr.bf16.mxu0 %v3902_v40  ;;  %1520 = vmatprep.subr.bf16.mxu1 %v3904_v41  ;;  %v4029_v40 = vld [vmem:[#allocation2 + $0x18] ss:$36 sps:$4 sm:$0xff]   ;;  %v4037_v41 = vld [vmem:[#allocation2 + $0x64] ss:$36 sps:$4 sm:$0xff]  }
  0x51   :  { %1435 = vmatpush1.bf16.msra.mxu0 %v3906_v42  ;;  %1521 = vmatpush1.bf16.msra.mxu1 %v3907_v43  ;;  %v3993_v42 = vld [vmem:[#allocation2 + $0x58] ss:$36 sps:$4 sm:$0xff]   ;;  %v3998_v43 = vld [vmem:[#allocation2 + $0xa4] ss:$36 sps:$4 sm:$0xff]  }
  0x52   :  { %1436 = vmatprep.subr.bf16.mxu0 %v3908_v44  ;;  %1522 = vmatprep.subr.bf16.mxu1 %v3910_v45  ;;  %v4035_v44 = vld [vmem:[#allocation2 + $0x60] ss:$36 sps:$4 sm:$0xff]   ;;  %v4043_v45 = vld [vmem:[#allocation2 + $0xac] ss:$36 sps:$4 sm:$0xff]  }
  0x55   :  { %1437 = vmatpush1.bf16.msra.mxu0 %v3912_v46  ;;  %1523 = vmatpush1.bf16.msra.mxu1 %v3913_v48  ;;  %v3996_v46 = vld [vmem:[#allocation2 + $0xa0] ss:$36 sps:$4 sm:$0xff]   ;;  %v4001_v48 = vld [vmem:[#allocation2 + $0xec] ss:$36 sps:$4 sm:$0xff]  }
  0x56   :  { %1438 = vmatprep.subr.bf16.mxu0 %v3914_v49  ;;  %1524 = vmatprep.subr.bf16.mxu1 %v3916_v50  ;;  %v4041_v49 = vld [vmem:[#allocation2 + $0xa8] ss:$36 sps:$4 sm:$0xff]   ;;  %v4049_v50 = vld [vmem:[#allocation2 + $0xf4] ss:$36 sps:$4 sm:$0xff]  }
  0x59   :  { %1439 = vmatpush1.bf16.msra.mxu0 %v3918_v51  ;;  %1525 = vmatpush1.bf16.msra.mxu1 %v3919_v52  ;;  %v3999_v51 = vld [vmem:[#allocation2 + $0xe8] ss:$36 sps:$4 sm:$0xff]   ;;  %v4004_v52 = vld [vmem:[#allocation2 + $0x134] ss:$36 sps:$4 sm:$0xff]  }
  0x5a   :  { %1440 = vmatprep.subr.bf16.mxu0 %v3920_v53  ;;  %1526 = vmatprep.subr.bf16.mxu1 %v3922_v54  ;;  %v4047_v53 = vld [vmem:[#allocation2 + $0xf0] ss:$36 sps:$4 sm:$0xff]   ;;  %v4055_v54 = vld [vmem:[#allocation2 + $0x13c] ss:$36 sps:$4 sm:$0xff]  }
  0x5d   :  { %1441 = vmatpush1.bf16.msra.mxu0 %v3924_v55  ;;  %1527 = vmatpush1.bf16.msra.mxu1 %v3925_v56  ;;  %v4002_v55 = vld [vmem:[#allocation2 + $0x130] ss:$36 sps:$4 sm:$0xff]   ;;  %v4007_v56 = vld [vmem:[#allocation2 + $0x17c] ss:$36 sps:$4 sm:$0xff]  }
  0x5e   :  { %1442 = vmatprep.subr.bf16.mxu0 %v3926_v57  ;;  %1528 = vmatprep.subr.bf16.mxu1 %v3928_v58  ;;  %v4061_v57 = vld [vmem:[#allocation2 + $0x184] ss:$36 sps:$4 sm:$0xff]   ;;  %v4005_v58 = vld [vmem:[#allocation2 + $0x178] ss:$36 sps:$4 sm:$0xff]  }
  0x61   :  { %1443 = vmatpush1.bf16.msra.mxu0 %v3930_v59  ;;  %1529 = vmatpush1.bf16.msra.mxu1 %v3931_v60  ;;  %v4010_v59 = vld [vmem:[#allocation2 + $0x1c4] ss:$36 sps:$4 sm:$0xff]  }
  0x62   :  { %1444 = vmatprep.subr.bf16.mxu0 %v3932_v61  ;;  %1530 = vmatprep.subr.bf16.mxu1 %v3934_v62  ;;  %v4059_v60 = vld [vmem:[#allocation2 + $0x180] ss:$36 sps:$4 sm:$0xff]   ;;  %v4067_v61 = vld [vmem:[#allocation2 + $0x1cc] ss:$36 sps:$4 sm:$0xff]  }
  0x63   :  { %v4008_v62 = vld [vmem:[#allocation2 + $0x1c0] ss:$36 sps:$4 sm:$0xff]  }
  0x65   :  { %1445 = vmatpush1.bf16.msra.mxu0 %v3936_v63  ;;  %1531 = vmatpush1.bf16.msra.mxu1 %v3937_v0  ;;  %v4013_v63 = vld [vmem:[#allocation2 + $0x20c] ss:$36 sps:$4 sm:$0xff]  }
  0x66   :  { %1457 = vmatprep.subr.bf16.mxu0 %v3942_v1  ;;  %1543 = vmatprep.subr.bf16.mxu1 %v3945_v2  ;;  %v4065_v0 = vld [vmem:[#allocation2 + $0x1c8] ss:$36 sps:$4 sm:$0xff]   ;;  %v4073_v1 = vld [vmem:[#allocation2 + $0x214] ss:$36 sps:$4 sm:$0xff]  }
  0x67   :  { %v4011_v2 = vld [vmem:[#allocation2 + $0x208] ss:$36 sps:$4 sm:$0xff]  }
  0x68   :  { %1447 = vmatmul.mubr.bf16.vlgmr.msra.gmra.mrb[0].mxu0 %v4453_v5  ;;  %1533 = vmatmul.mubr.bf16.vlgmr.msra.gmra.mrb[0].mxu1 %v4453_v5 }
  0x69   :  { %1458 = vmatpush1.bf16.msra.mxu0 %v3940_v3  ;;  %1544 = vmatpush1.bf16.msra.mxu1 %v3943_v4  ;;  %v4016_v3 = vld [vmem:[#allocation2 + $0x254] ss:$36 sps:$4 sm:$0xff]  }
  0x6a   :  { %1459 = vmatprep.subr.bf16.mxu0 %v3949_v6  ;;  %1545 = vmatprep.subr.bf16.mxu1 %v3952_v7  ;;  %v4071_v4 = vld [vmem:[#allocation2 + $0x210] ss:$36 sps:$4 sm:$0xff]   ;;  %v4079_v6 = vld [vmem:[#allocation2 + $0x25c] ss:$36 sps:$4 sm:$0xff]  }
  0x6b   :  { %1489 = vmatprep.mubr.bf16.mxu0 %v4382_v12  ;;  %1575 = vmatprep.mubr.bf16.mxu1 %v4382_v12  ;;  %v4014_v7 = vld [vmem:[#allocation2 + $0x250] ss:$36 sps:$4 sm:$0xff]  }
  0x6d   :  { %1460 = vmatpush1.bf16.msra.mxu0 %v3947_v8  ;;  %1546 = vmatpush1.bf16.msra.mxu1 %v3950_v9  ;;  %v4019_v8 = vld [vmem:[#allocation2 + $0x29c] ss:$36 sps:$4 sm:$0xff]  }
  0x6e   :  { %1461 = vmatprep.subr.bf16.mxu0 %v3955_v10  ;;  %1547 = vmatprep.subr.bf16.mxu1 %v3958_v11  ;;  %v4077_v9 = vld [vmem:[#allocation2 + $0x258] ss:$36 sps:$4 sm:$0xff]   ;;  %v4085_v10 = vld [vmem:[#allocation2 + $0x2a4] ss:$36 sps:$4 sm:$0xff]  }
  0x6f   :  { %v4017_v11 = vld [vmem:[#allocation2 + $0x298] ss:$36 sps:$4 sm:$0xff]  }
  0x71   :  { %1462 = vmatpush1.bf16.msra.mxu0 %v3953_v13  ;;  %1548 = vmatpush1.bf16.msra.mxu1 %v3956_v14  ;;  %v4022_v13 = vld [vmem:[#allocation2 + $0x2e4] ss:$36 sps:$4 sm:$0xff]  }
  0x72   :  { %1463 = vmatprep.subr.bf16.mxu0 %v3961_v15  ;;  %1549 = vmatprep.subr.bf16.mxu1 %v3964_v16  ;;  %v4083_v14 = vld [vmem:[#allocation2 + $0x2a0] ss:$36 sps:$4 sm:$0xff]   ;;  %v4091_v15 = vld [vmem:[#allocation2 + $0x2ec] ss:$36 sps:$4 sm:$0xff]  }
  0x73   :  { %v4020_v16 = vld [vmem:[#allocation2 + $0x2e0] ss:$36 sps:$4 sm:$0xff]  }
  0x75   :  { %1464 = vmatpush1.bf16.msra.mxu0 %v3959_v17  ;;  %1550 = vmatpush1.bf16.msra.mxu1 %v3962_v18  ;;  %v4025_v17 = vld [vmem:[#allocation2 + $0x32c] ss:$36 sps:$4 sm:$0xff]  }
  0x76   :  { %1465 = vmatprep.subr.bf16.mxu0 %v3967_v19  ;;  %1551 = vmatprep.subr.bf16.mxu1 %v3970_v20  ;;  %v4089_v18 = vld [vmem:[#allocation2 + $0x2e8] ss:$36 sps:$4 sm:$0xff]   ;;  %v4097_v19 = vld [vmem:[#allocation2 + $0x334] ss:$36 sps:$4 sm:$0xff]  }
  0x77   :  { %v4023_v20 = vld [vmem:[#allocation2 + $0x328] ss:$36 sps:$4 sm:$0xff]  }
  0x79   :  { %1466 = vmatpush1.bf16.msra.mxu0 %v3965_v21  ;;  %1552 = vmatpush1.bf16.msra.mxu1 %v3968_v22  ;;  %v4028_v21 = vld [vmem:[#allocation2 + $0x374] ss:$36 sps:$4 sm:$0xff]  }
  0x7a   :  { %1467 = vmatprep.subr.bf16.mxu0 %v3973_v23  ;;  %1553 = vmatprep.subr.bf16.mxu1 %v3976_v24  ;;  %v4095_v22 = vld [vmem:[#allocation2 + $0x330] ss:$36 sps:$4 sm:$0xff]   ;;  %v4100_v23 = vld [vmem:[#allocation2 + $0x37c] ss:$36 sps:$4 sm:$0xff]  }
  0x7b   :  { %v4026_v24 = vld [vmem:[#allocation2 + $0x370] ss:$36 sps:$4 sm:$0xff]  }
  0x7d   :  { %1468 = vmatpush1.bf16.msra.mxu0 %v3971_v25  ;;  %1554 = vmatpush1.bf16.msra.mxu1 %v3974_v26  ;;  %v4034_v25 = vld [vmem:[#allocation2 + $0x3bc] ss:$36 sps:$4 sm:$0xff]  }
  0x7e   :  { %1469 = vmatprep.subr.bf16.mxu0 %v3979_v27  ;;  %1555 = vmatprep.subr.bf16.mxu1 %v3982_v28  ;;  %v4098_v26 = vld [vmem:[#allocation2 + $0x378] ss:$36 sps:$4 sm:$0xff]   ;;  %v4103_v27 = vld [vmem:[#allocation2 + $0x3c4] ss:$36 sps:$4 sm:$0xff]  }
  0x7f   :  { %v4032_v28 = vld [vmem:[#allocation2 + $0x3b8] ss:$36 sps:$4 sm:$0xff]  }
  0x81   :  { %1470 = vmatpush1.bf16.msra.mxu0 %v3977_v29  ;;  %1556 = vmatpush1.bf16.msra.mxu1 %v3980_v30  ;;  %v4040_v29 = vld [vmem:[#allocation2 + $0x404] ss:$36 sps:$4 sm:$0xff]  }
  0x82   :  { %1471 = vmatprep.subr.bf16.mxu0 %v3985_v31  ;;  %1557 = vmatprep.subr.bf16.mxu1 %v3988_v32  ;;  %v4101_v30 = vld [vmem:[#allocation2 + $0x3c0] ss:$36 sps:$4 sm:$0xff]   ;;  %v4106_v31 = vld [vmem:[#allocation2 + $0x40c] ss:$36 sps:$4 sm:$0xff]  }
  0x83   :  { %v4038_v32 = vld [vmem:[#allocation2 + $0x400] ss:$36 sps:$4 sm:$0xff]  }
  0x85   :  { %1472 = vmatpush1.bf16.msra.mxu0 %v3983_v33  ;;  %1558 = vmatpush1.bf16.msra.mxu1 %v3986_v34  ;;  %v4046_v33 = vld [vmem:[#allocation2 + $0x44c] ss:$36 sps:$4 sm:$0xff]  }
  0x86   :  { %1586 = vmatprep.subr.bf16.mxu0 %v3992_v35  ;;  %1672 = vmatprep.subr.bf16.mxu1 %v4031_v36  ;;  %v4104_v34 = vld [vmem:[#allocation2 + $0x408] ss:$36 sps:$4 sm:$0xff]   ;;  %v4109_v35 = vld [vmem:[#allocation2 + $0x454] ss:$36 sps:$4 sm:$0xff]  }
  0x87   :  { %v4044_v36 = vld [vmem:[#allocation2 + $0x448] ss:$36 sps:$4 sm:$0xff]  }
  0x88   :  { %1490 = vmatmul.mubr.bf16.vlgmr.msra.gmra.mrb[0].mxu0 %v4462_v37  ;;  %1576 = vmatmul.mubr.bf16.vlgmr.msra.gmra.mrb[0].mxu1 %v4462_v37 }
  0x89   :  { %1587 = vmatpush1.bf16.msra.mxu0 %v3990_v38  ;;  %1673 = vmatpush1.bf16.msra.mxu1 %v4029_v40  ;;  %v4107_v38 = vld [vmem:[#allocation2 + $0x450] ss:$36 sps:$4 sm:$0xff]   ;;  %v4112_v40 = vld [vmem:[#allocation2 + $0x49c] ss:$36 sps:$4 sm:$0xff]  }
  0x8a   :  { %1588 = vmatprep.subr.bf16.mxu0 %v3995_v39  ;;  %1674 = vmatprep.subr.bf16.mxu1 %v4037_v41  ;;  %v4052_v39 = vld [vmem:[#allocation2 + $0x494] ss:$36 sps:$4 sm:$0xff]  }
  0x8b   :  { %1618 = vmatprep.mubr.bf16.mxu0 %v4446_v47  ;;  %1704 = vmatprep.mubr.bf16.mxu1 %v4446_v47  ;;  %v4053_v47 = vld [vmem:[#allocation2 + $0x138] ss:$36 sps:$4 sm:$0xff]   ;;  %v4050_v41 = vld [vmem:[#allocation2 + $0x490] ss:$36 sps:$4 sm:$0xff]  }
  0x8d   :  { %1589 = vmatpush1.bf16.msra.mxu0 %v3993_v42  ;;  %1675 = vmatpush1.bf16.msra.mxu1 %v4035_v44  ;;  %v4058_v42 = vld [vmem:[#allocation2 + $0x4dc] ss:$36 sps:$4 sm:$0xff]   ;;  %v4115_v44 = vld [vmem:[#allocation2 + $0x4e4] ss:$36 sps:$4 sm:$0xff]  }
  0x8e   :  { %1590 = vmatprep.subr.bf16.mxu0 %v3998_v43  ;;  %1676 = vmatprep.subr.bf16.mxu1 %v4043_v45  ;;  %v4110_v43 = vld [vmem:[#allocation2 + $0x498] ss:$36 sps:$4 sm:$0xff]  }
  0x8f   :  { %v4056_v45 = vld [vmem:[#allocation2 + $0x4d8] ss:$36 sps:$4 sm:$0xff]  }
  0x91   :  { %1591 = vmatpush1.bf16.msra.mxu0 %v3996_v46  ;;  %1677 = vmatpush1.bf16.msra.mxu1 %v4041_v49  ;;  %v4064_v46 = vld [vmem:[#allocation2 + $0x524] ss:$36 sps:$4 sm:$0xff]   ;;  %v4118_v49 = vld [vmem:[#allocation2 + $0x52c] ss:$36 sps:$4 sm:$0xff]  }
  0x92   :  { %1592 = vmatprep.subr.bf16.mxu0 %v4001_v48  ;;  %1678 = vmatprep.subr.bf16.mxu1 %v4049_v50  ;;  %v4113_v48 = vld [vmem:[#allocation2 + $0x4e0] ss:$36 sps:$4 sm:$0xff]  }
  0x93   :  { %v4062_v50 = vld [vmem:[#allocation2 + $0x520] ss:$36 sps:$4 sm:$0xff]  }
  0x95   :  { %1593 = vmatpush1.bf16.msra.mxu0 %v3999_v51  ;;  %1679 = vmatpush1.bf16.msra.mxu1 %v4047_v53  ;;  %v4070_v51 = vld [vmem:[#allocation2 + $0x56c] ss:$36 sps:$4 sm:$0xff]   ;;  %v4121_v53 = vld [vmem:[#allocation2 + $0x574] ss:$36 sps:$4 sm:$0xff]  }
  0x96   :  { %1594 = vmatprep.subr.bf16.mxu0 %v4004_v52  ;;  %1680 = vmatprep.subr.bf16.mxu1 %v4055_v54  ;;  %v4116_v52 = vld [vmem:[#allocation2 + $0x528] ss:$36 sps:$4 sm:$0xff]  }
  0x97   :  { %v4068_v54 = vld [vmem:[#allocation2 + $0x568] ss:$36 sps:$4 sm:$0xff]  }
  0x99   :  { %1595 = vmatpush1.bf16.msra.mxu0 %v4002_v55  ;;  %1681 = vmatpush1.bf16.msra.mxu1 %v4053_v47  ;;  %v4119_v55 = vld [vmem:[#allocation2 + $0x570] ss:$36 sps:$4 sm:$0xff]  }
  0x9a   :  { %1596 = vmatprep.subr.bf16.mxu0 %v4007_v56  ;;  %1682 = vmatprep.subr.bf16.mxu1 %v4061_v57  ;;  %v4124_v56 = vld [vmem:[#allocation2 + $0x5bc] ss:$36 sps:$4 sm:$0xff]   ;;  %v4074_v47 = vld [vmem:[#allocation2 + $0x5b0] ss:$36 sps:$4 sm:$0xff]  }
  0x9b   :  { %v4082_v57 = vld [vmem:[#allocation2 + $0x5fc] ss:$36 sps:$4 sm:$0xff]  }
  0x9d   :  { %1597 = vmatpush1.bf16.msra.mxu0 %v4005_v58  ;;  %1683 = vmatpush1.bf16.msra.mxu1 %v4059_v60  ;;  %v4122_v58 = vld [vmem:[#allocation2 + $0x5b8] ss:$36 sps:$4 sm:$0xff]  }
  0x9e   :  { %1598 = vmatprep.subr.bf16.mxu0 %v4010_v59  ;;  %1684 = vmatprep.subr.bf16.mxu1 %v4067_v61  ;;  %v4127_v59 = vld [vmem:[#allocation2 + $0x604] ss:$36 sps:$4 sm:$0xff]   ;;  %v4080_v60 = vld [vmem:[#allocation2 + $0x5f8] ss:$36 sps:$4 sm:$0xff]  }
  0x9f   :  { %v4088_v61 = vld [vmem:[#allocation2 + $0x644] ss:$36 sps:$4 sm:$0xff]  }
  0xa1   :  { %1599 = vmatpush1.bf16.msra.mxu0 %v4008_v62  ;;  %1685 = vmatpush1.bf16.msra.mxu1 %v4065_v0  ;;  %v4125_v62 = vld [vmem:[#allocation2 + $0x600] ss:$36 sps:$4 sm:$0xff]  }
  0xa2   :  { %1600 = vmatprep.subr.bf16.mxu0 %v4013_v63  ;;  %1686 = vmatprep.subr.bf16.mxu1 %v4073_v1  ;;  %v4130_v63 = vld [vmem:[#allocation2 + $0x64c] ss:$36 sps:$4 sm:$0xff]   ;;  %v4086_v0 = vld [vmem:[#allocation2 + $0x640] ss:$36 sps:$4 sm:$0xff]  }
  0xa3   :  { %v4094_v1 = vld [vmem:[#allocation2 + $0x68c] ss:$36 sps:$4 sm:$0xff]  }
  0xa5   :  { %1601 = vmatpush1.bf16.msra.mxu0 %v4011_v2  ;;  %1687 = vmatpush1.bf16.msra.mxu1 %v4071_v4  ;;  %v4128_v2 = vld [vmem:[#allocation2 + $0x648] ss:$36 sps:$4 sm:$0xff]  }
  0xa6   :  { %1602 = vmatprep.subr.bf16.mxu0 %v4016_v3  ;;  %1688 = vmatprep.subr.bf16.mxu1 %v4079_v6  ;;  %v4133_v3 = vld [vmem:[#allocation2 + $0x694] ss:$36 sps:$4 sm:$0xff]   ;;  %v4092_v4 = vld [vmem:[#allocation2 + $0x688] ss:$36 sps:$4 sm:$0xff]  }
  0xa7   :  { %v4131_v6 = vld [vmem:[#allocation2 + $0x690] ss:$36 sps:$4 sm:$0xff]  }
  0xa9   :  { %1603 = vmatpush1.bf16.msra.mxu0 %v4014_v7  ;;  %1689 = vmatpush1.bf16.msra.mxu1 %v4077_v9  ;;  %v4134_v7 = vld [vmem:[#allocation2 + $0x260] ss:$36 sps:$4 sm:$0xff]  }
  0xaa   :  { %1604 = vmatprep.subr.bf16.mxu0 %v4019_v8  ;;  %1690 = vmatprep.subr.bf16.mxu1 %v4085_v10  ;;  %v4136_v8 = vld [vmem:[#allocation2 + $0x20] ss:$36 sps:$4 sm:$0xff]   ;;  %v4137_v10 = vld [vmem:[#allocation2 + $0x2a8] ss:$36 sps:$4 sm:$0xff]  }
  0xab   :  { %v4135_v9 = vld [vmem:[#allocation2 + $0x4a0] ss:$36 sps:$4 sm:$0xff]  }
  0xad   :  { %1605 = vmatpush1.bf16.msra.mxu0 %v4017_v11  ;;  %1691 = vmatpush1.bf16.msra.mxu1 %v4083_v14  ;;  %v4383_v11 = vmov 0.0   ;;  %v4138_v14 = vld [vmem:[#allocation2 + $0x4e8] ss:$36 sps:$4 sm:$0xff]  }
  0xae   :  { %1606 = vmatprep.subr.bf16.mxu0 %v4022_v13  ;;  %1692 = vmatprep.subr.bf16.mxu1 %v4091_v15  ;;  %v4139_v13 = vld [vmem:[#allocation2 + $0x68] ss:$36 sps:$4 sm:$0xff]   ;;  %v4140_v15 = vld [vmem:[#allocation2 + $0x2f0] ss:$36 sps:$4 sm:$0xff]  }
  0xb1   :  { %1607 = vmatpush1.bf16.msra.mxu0 %v4020_v16  ;;  %1693 = vmatpush1.bf16.msra.mxu1 %v4089_v18  ;;  %v4302_v16 = vld [vmem:[%s4725_s0 + $0x4] ss:$12 sps:$4 sm:$0xff]   ;;  %v4141_v18 = vld [vmem:[#allocation2 + $0x530] ss:$36 sps:$4 sm:$0xff]  }
  0xb2   :  { %1608 = vmatprep.subr.bf16.mxu0 %v4025_v17  ;;  %1694 = vmatprep.subr.bf16.mxu1 %v4097_v19  ;;  %v4142_v17 = vld [vmem:[#allocation2 + $0xb0] ss:$36 sps:$4 sm:$0xff]   ;;  %v4143_v19 = vld [vmem:[#allocation2 + $0x338] ss:$36 sps:$4 sm:$0xff]  }
  0xb5   :  { %1609 = vmatpush1.bf16.msra.mxu0 %v4023_v20  ;;  %1695 = vmatpush1.bf16.msra.mxu1 %v4095_v22  ;;  %v4145_v20 = vld [vmem:[#allocation2 + $0xf8] ss:$36 sps:$4 sm:$0xff]   ;;  %v4146_v22 = vld [vmem:[#allocation2 + $0x380] ss:$36 sps:$4 sm:$0xff]  }
  0xb6   :  { %1610 = vmatprep.subr.bf16.mxu0 %v4028_v21  ;;  %1696 = vmatprep.subr.bf16.mxu1 %v4100_v23  ;;  %v4144_v21 = vld [vmem:[#allocation2 + $0x578] ss:$36 sps:$4 sm:$0xff]   ;;  %v4148_v23 = vld [vmem:[#allocation2 + $0x140] ss:$36 sps:$4 sm:$0xff]  }
  0xb9   :  { %1611 = vmatpush1.bf16.msra.mxu0 %v4026_v24  ;;  %1697 = vmatpush1.bf16.msra.mxu1 %v4098_v26  ;;  %v4147_v24 = vld [vmem:[#allocation2 + $0x5c0] ss:$36 sps:$4 sm:$0xff]   ;;  %v4151_v26 = vld [vmem:[#allocation2 + $0x188] ss:$36 sps:$4 sm:$0xff]  }
  0xba   :  { %1612 = vmatprep.subr.bf16.mxu0 %v4034_v25  ;;  %1698 = vmatprep.subr.bf16.mxu1 %v4103_v27  ;;  %v4149_v25 = vld [vmem:[#allocation2 + $0x3c8] ss:$36 sps:$4 sm:$0xff]  }
  0xbb   :  { %v4150_v27 = vld [vmem:[#allocation2 + $0x608] ss:$36 sps:$4 sm:$0xff]  }
  0xbd   :  { %1613 = vmatpush1.bf16.msra.mxu0 %v4032_v28  ;;  %1699 = vmatpush1.bf16.msra.mxu1 %v4101_v30  ;;  %v4152_v28 = vld [vmem:[#allocation2 + $0x410] ss:$36 sps:$4 sm:$0xff]  }
  0xbe   :  { %1614 = vmatprep.subr.bf16.mxu0 %v4040_v29  ;;  %1700 = vmatprep.subr.bf16.mxu1 %v4106_v31  ;;  %v4154_v29 = vld [vmem:[#allocation2 + $0x1d0] ss:$36 sps:$4 sm:$0xff]   ;;  %v4155_v31 = vld [vmem:[#allocation2 + $0x458] ss:$36 sps:$4 sm:$0xff]  }
  0xbf   :  { %v4153_v30 = vld [vmem:[#allocation2 + $0x650] ss:$36 sps:$4 sm:$0xff]  }
  0xc1   :  { %1615 = vmatpush1.bf16.msra.mxu0 %v4038_v32  ;;  %1701 = vmatpush1.bf16.msra.mxu1 %v4104_v34  ;;  %v4157_v32 = vld [vmem:[#allocation2 + $0x218] ss:$36 sps:$4 sm:$0xff]   ;;  %v4303_v34 = vld [vmem:[%s4725_s0] ss:$12 sps:$4 sm:$0xff]  }
  0xc2   :  { %1616 = vmatprep.subr.bf16.mxu0 %v4046_v33  ;;  %1702 = vmatprep.subr.bf16.mxu1 %v4109_v35  ;;  %v4156_v33 = vld [vmem:[#allocation2 + $0x698] ss:$36 sps:$4 sm:$0xff]  }
  0xc5   :  { %1617 = vmatpush1.bf16.msra.mxu0 %v4044_v36  ;;  %1703 = vmatpush1.bf16.msra.mxu1 %v4107_v38 }
  0xc6   :  { %1629 = vmatprep.subr.bf16.mxu0 %v4052_v39  ;;  %1715 = vmatprep.subr.bf16.mxu1 %v4112_v40 }
  0xc8   :  { %1619 = vmatmul.mubr.bf16.vlgmr.msra.gmra.mrb[4].mxu0 %v4453_v5  ;;  %1705 = vmatmul.mubr.bf16.vlgmr.msra.gmra.mrb[4].mxu1 %v4453_v5  ;;  %v4076_v5 = vld [vmem:[#allocation2 + $0x5b4] ss:$36 sps:$4 sm:$0xff]  }
  0xc9   :  { %1630 = vmatpush1.bf16.msra.mxu0 %v4050_v41  ;;  %1661 = vmatprep.mubr.bf16.mxu0 %v4382_v12 }
  0xca   :  { %1631 = vmatprep.subr.bf16.mxu0 %v4058_v42  ;;  %1716 = vmatpush1.bf16.msra.mxu1 %v4110_v43 }
  0xcb   :  { %1717 = vmatprep.subr.bf16.mxu1 %v4115_v44  ;;  %1747 = vmatprep.mubr.bf16.mxu1 %v4382_v12 }
  0xcd   :  { %1632 = vmatpush1.bf16.msra.mxu0 %v4056_v45 }
  0xce   :  { %1633 = vmatprep.subr.bf16.mxu0 %v4064_v46  ;;  %1718 = vmatpush1.bf16.msra.mxu1 %v4113_v48 }
  0xcf   :  { %1719 = vmatprep.subr.bf16.mxu1 %v4118_v49 }
  0xd1   :  { %1634 = vmatpush1.bf16.msra.mxu0 %v4062_v50 }
  0xd2   :  { %1635 = vmatprep.subr.bf16.mxu0 %v4070_v51  ;;  %1720 = vmatpush1.bf16.msra.mxu1 %v4116_v52 }
  0xd3   :  { %1721 = vmatprep.subr.bf16.mxu1 %v4121_v53 }
  0xd5   :  { %1636 = vmatpush1.bf16.msra.mxu0 %v4068_v54 }
  0xd6   :  { %1637 = vmatprep.subr.bf16.mxu0 %v4076_v5  ;;  %1722 = vmatpush1.bf16.msra.mxu1 %v4119_v55 }
  0xd7   :  { %1723 = vmatprep.subr.bf16.mxu1 %v4124_v56 }
  0xd9   :  { %1638 = vmatpush1.bf16.msra.mxu0 %v4074_v47 }
  0xda   :  { %1639 = vmatprep.subr.bf16.mxu0 %v4082_v57  ;;  %1724 = vmatpush1.bf16.msra.mxu1 %v4122_v58 }
  0xdb   :  { %1725 = vmatprep.subr.bf16.mxu1 %v4127_v59 }
  0xdd   :  { %1640 = vmatpush1.bf16.msra.mxu0 %v4080_v60 }
  0xde   :  { %1641 = vmatprep.subr.bf16.mxu0 %v4088_v61  ;;  %1726 = vmatpush1.bf16.msra.mxu1 %v4125_v62 }
  0xdf   :  { %1727 = vmatprep.subr.bf16.mxu1 %v4130_v63 }
  0xe1   :  { %1642 = vmatpush1.bf16.msra.mxu0 %v4086_v0 }
  0xe2   :  { %1643 = vmatprep.subr.bf16.mxu0 %v4094_v1  ;;  %1728 = vmatpush1.bf16.msra.mxu1 %v4128_v2 }
  0xe3   :  { %1729 = vmatprep.subr.bf16.mxu1 %v4133_v3 }
  0xe5   :  { %1644 = vmatpush1.bf16.msra.mxu0 %v4092_v4 }
  0xe6   :  { %1730 = vmatpush1.bf16.msra.mxu1 %v4131_v6  ;;  %3592 = vmatprep.subr.bf16.mxu0 %v4134_v7 }
  0xe7   :  { %3678 = vmatprep.subr.bf16.mxu1 %v4383_v11 }
  0xe8   :  { %1662 = vmatmul.mubr.bf16.vlgmr.msra.gmra.mrb[4].mxu0 %v4462_v37 }
  0xe9   :  { %1748 = vmatmul.mubr.bf16.vlgmr.msra.gmra.mrb[4].mxu1 %v4462_v37  ;;  %3593 = vmatpush3.bf16.msra.mxu0 %v4136_v8 }
  0xea   :  { %3679 = vmatpush3.bf16.msra.mxu1 %v4135_v9  ;;  %3594 = vmatprep.subr.bf16.mxu0 %v4137_v10  ;;  %v4528_v10 = vld [vmem:[%s4729_s4] sm:$0xff] }
  0xeb   :  { %3680 = vmatprep.subr.bf16.mxu1 %v4383_v11  ;;  %1790 = vmatprep.mubr.bf16.mxu0 %v4302_v16 }
  0xec   :  { %3694 = vmatprep.mubr.msk.bf16.mxu1 %vm4384_vm0, %v4383_v11 }
  0xed   :  { %3595 = vmatpush3.bf16.msra.mxu0 %v4139_v13 }
  0xee   :  { %3681 = vmatpush3.bf16.msra.mxu1 %v4138_v14  ;;  %3596 = vmatprep.subr.bf16.mxu0 %v4140_v15  ;;  %v4533_v14 = vld [vmem:[%s4729_s4 + $0x8] sm:$0xff] }
  0xef   :  { %3682 = vmatprep.subr.bf16.mxu1 %v4383_v11 }
  0xf1   :  { %3597 = vmatpush3.bf16.msra.mxu0 %v4142_v17 }
  0xf2   :  { %3683 = vmatpush3.bf16.msra.mxu1 %v4141_v18  ;;  %3598 = vmatprep.subr.bf16.mxu0 %v4143_v19 }
  0xf3   :  { %3684 = vmatprep.subr.bf16.mxu1 %v4383_v11 }
  0xf5   :  { %3599 = vmatpush3.bf16.msra.mxu0 %v4145_v20 }
  0xf6   :  { %3685 = vmatpush3.bf16.msra.mxu1 %v4144_v21  ;;  %3600 = vmatprep.subr.bf16.mxu0 %v4146_v22 }
  0xf7   :  { %3686 = vmatprep.subr.bf16.mxu1 %v4383_v11 }
  0xf9   :  { %3601 = vmatpush3.bf16.msra.mxu0 %v4148_v23 }
  0xfa   :  { %3687 = vmatpush3.bf16.msra.mxu1 %v4147_v24  ;;  %3602 = vmatprep.subr.bf16.mxu0 %v4149_v25 }
  0xfb   :  { %3688 = vmatprep.subr.bf16.mxu1 %v4383_v11 }
  0xfd   :  { %3603 = vmatpush3.bf16.msra.mxu0 %v4151_v26 }
  0xfe   :  { %3689 = vmatpush3.bf16.msra.mxu1 %v4150_v27  ;;  %3604 = vmatprep.subr.bf16.mxu0 %v4152_v28 }
  0xff   :  { %3690 = vmatprep.subr.bf16.mxu1 %v4383_v11 }
 0x101   :  { %3605 = vmatpush3.bf16.msra.mxu0 %v4154_v29 }
 0x102   :  { %3691 = vmatpush3.bf16.msra.mxu1 %v4153_v30  ;;  %3606 = vmatprep.subr.bf16.mxu0 %v4155_v31 }
 0x103   :  { %3692 = vmatprep.subr.bf16.mxu1 %v4383_v11 }
 0x105   :  { %3607 = vmatpush3.bf16.msra.mxu0 %v4157_v32 }
 0x106   :  { %3693 = vmatpush3.bf16.msra.mxu1 %v4156_v33  ;;  %3722 = vmatprep.subr.bf16.mxu0 %v4383_v11 }
 0x107   :  { %3698 = vmatprep.subr.bf16.mxu1 %v4383_v11 }
 0x108   :  { %1791 = vmatmul.mubr.bf16.vlgmr.msra.gmra.mrb[8].mxu0 %v4303_v34 }
 0x109   :  { %3695 = vmatmul.mubr.bf16.vlgmr.msra.gmra.mrb[8].mxu1 %v4462_v37  ;;  %3724 = vmatprep.mubr.msk.bf16.mxu0 %vm4384_vm0, %v4383_v11 }
 0x10a   :  { %3700 = vmatprep.mubr.msk.bf16.mxu1 %vm4384_vm0, %v4383_v11 }
 0x15b   :  { %v1491_v35 = vpop.f32.mrb[0].mxu0  ;;  %v1577_v36 = vpop.f32.mrb[0].mxu1 }
 0x15c   :  { %v1493_v38 = vpop.f32.mrb[1].mxu0  ;;  %v1579_v39 = vpop.f32.mrb[1].mxu1 }
 0x15d   :  { %v1495_v40 = vpop.f32.mrb[2].mxu0  ;;  %v1581_v41 = vpop.f32.mrb[2].mxu1 }
 0x15e   :  { %v4497_v42 = vpack.c.bf16 %v1495_v40, %v1491_v35  ;;  %v4499_v43 = vpack.c.bf16 %v1581_v41, %v1577_v36  ;;  %v1497_v44 = vpop.f32.mrb[3].mxu0  ;;  %v1583_v45 = vpop.f32.mrb[3].mxu1 }
 0x15f   :  { %v4501_v37 = vpack.c.bf16 %v1497_v44, %v1493_v38  ;;  %v1843_v46 = vpack.c.bf16 %v1583_v45, %v1579_v39 }
 0x161   :  { %v1850_v48 = vsel %vm1845_vm1, %v1843_v46, 0 }
 0x162   :  { %3699 = vmatpush3.bf16.xpose.msra.mxu1 %v1850_v48 }
 0x163   :  { %3704 = vmatprep.subr.bf16.mxu1 %v4383_v11 }
 0x169   :  { %3701 = vmatmul.mubr.msk.bf16.vlgmr.msra.gmra.mrb[12].mxu1 %vm1845_vm1, %v4497_v42 }
 0x16a   :  { %3706 = vmatprep.mubr.msk.bf16.mxu1 %vm4384_vm0, %v4383_v11 }
 0x1bb   :  { %v1663_v49 = vpop.f32.mrb[4].mxu0 }
 0x1bc   :  { %v1665_v50 = vpop.f32.mrb[5].mxu0  ;;  %v1749_v51 = vpop.f32.mrb[4].mxu1 }
 0x1bd   :  { %v1667_v52 = vpop.f32.mrb[6].mxu0  ;;  %v1751_v53 = vpop.f32.mrb[5].mxu1 }
 0x1be   :  { %v2096_v54 = vpack.c.bf16 %v1667_v52, %v1663_v49  ;;  %v1753_v5 = vpop.f32.mrb[6].mxu1  ;;  %v1669_v55 = vpop.f32.mrb[7].mxu0 }
 0x1bf   :  { %v4509_v56 = vpack.c.bf16 %v1753_v5, %v1749_v51  ;;  %v1755_v47 = vpop.f32.mrb[7].mxu1  ;;  %v4511_v57 = vpack.c.bf16 %v1669_v55, %v1665_v50 }
 0x1c0   :  { %v2102_v58 = vsel %vm1845_vm1, %v2096_v54, 0  ;;  %v4514_v59 = vpack.c.bf16 %v1755_v47, %v1751_v53 }
 0x1c1   :  { %3723 = vmatpush3.bf16.xpose.msra.mxu0 %v2102_v58  ;;  %3705 = vmatpush3.bf16.msra.mxu1 %v4509_v56  ;;  %v2353_v51 = vsel %vm1845_vm1, %v4511_v57, 0 }
 0x1c2   :  { %3734 = vmatprep.subr.bf16.mxu0 %v4383_v11  ;;  %3710 = vmatprep.subr.bf16.mxu1 %v4383_v11 }
 0x1c8   :  { %3725 = vmatmul.mubr.msk.bf16.vlgmr.msra.gmra.mrb[12].mxu0 %vm1845_vm1, %v4501_v37 }
 0x1c9   :  { %3736 = vmatprep.mubr.msk.bf16.mxu0 %vm4384_vm0, %v4383_v11 }
 0x1db   :  { %v3608_v60 = vpop.f32.mrb[8].mxu0 }
 0x1dc   :  { %v3609_v61 = vpop.f32.mrb[9].mxu0  ;;  %v1833_v62 = vpop.f32.mrb[8].mxu1 }
 0x1dd   :  { %v3610_v63 = vadd.f32 %v3609_v61, %v3608_v60  ;;  %v3611_v0 = vpop.f32.mrb[10].mxu0  ;;  %v3696_v1 = vpop.f32.mrb[9].mxu1 }
 0x1de   :  { %v3612_v2 = vpop.f32.mrb[11].mxu0  ;;  %v1836_v3 = vpop.f32.mrb[10].mxu1 }
 0x1df   :  { %v1834_v4 = vadd.f32 %v3610_v63, %v1833_v62  ;;  %v3613_v6 = vadd.f32 %v3612_v2, %v3611_v0  ;;  %v3697_v7 = vpop.f32.mrb[11].mxu1 }
 0x1e1   :  { %v1837_v8 = vadd.f32 %v3613_v6, %v1836_v3 }
 0x1e3   :  { %v4523_v9 = vpack.c.bf16 %v1837_v8, %v1834_v4 }
 0x23c   :  { %v1886_v13 = vpop.f32.mrb[12].mxu1 }
 0x23d   :  { %v1887_v15 = vadd.f32 %v1886_v13, %v4528_v10  ;;  %v3702_v16 = vpop.f32.mrb[13].mxu1 }
 0x23e   :  { %v1889_v17 = vpop.f32.mrb[14].mxu1 }
 0x23f   :  { %v1890_v18 = vadd.f32 %v1889_v17, %v4533_v14  ;;  %v3703_v19 = vpop.f32.mrb[15].mxu1  ;;  %v1894_v20 = vsel %vm1893_vm2, %v1887_v15, -inf }
 0x240   :  { %1895 = vmax.xlane.f32.xlu0 %v1894_v20 }
 0x241   :  { %v1897_v21 = vsel %vm1893_vm2, %v1890_v18, -inf }
 0x244   :  { %1898 = vmax.xlane.f32.xlu0 %v1897_v21 }
 0x25a   :  { %1965 = vrot.lane.b32.xlu0 %v1843_v46, %s4385_s7 }
 0x25e   :  { %2467 = vrot.lane.b32.xlu0 %v4511_v57, %s4385_s7 }
 0x29b   :  { %v4542_v22 = vpop.f32.mrb[12].mxu0 }
 0x29c   :  { %v3726_v23 = vpop.f32.mrb[13].mxu0  ;;  %v2139_v4 = vadd.f32 %v4542_v22, %v4528_v10 }
 0x29d   :  { %v4544_v24 = vpop.f32.mrb[14].mxu0 }
 0x29e   :  { %v3727_v25 = vpop.f32.mrb[15].mxu0  ;;  %v2145_v19 = vsel %vm1893_vm2, %v2139_v4, -inf }
 0x2cd   :  { %v1896_v26 = vpop.xlane.xlu0 %1895 }
 0x2ce   :  { %v1900_v27 = vsub.f32 %v1887_v15, %v1896_v26 }
 0x2d0   :  { %v1902_v28 = vmul.f32 1.442695, %v1900_v27 }
 0x2d1   :  { %v1899_v29 = vpop.xlane.xlu0 %1898 }
 0x2d2   :  { %4254 = vpow2.f32 %v1902_v28  ;;  %v1901_v30 = vsub.f32 %v1890_v18, %v1899_v29  ;;  %v2142_v18 = vadd.f32 %v4544_v24, %v4533_v14 }
 0x2d4   :  { %v1904_v31 = vmul.f32 1.442695, %v1901_v30  ;;  %v2148_v27 = vsel %vm1893_vm2, %v2142_v18, -inf }
 0x2d5   :  { %v1966_v48 = vpop.permute.xlu0 %1965 }
 0x2d6   :  { %4256 = vpow2.f32 %v1904_v31  ;;  %v1971_v49 = vsel %vm1845_vm1, %v1966_v48, 0 }
 0x2d9   :  { %v2468_v52 = vpop.permute.xlu0 %2467 }
 0x2da   :  { %v2473_v53 = vsel %vm1845_vm1, %v2468_v52, 0 }
 0x2dc   :  { %v4255_v32 = vpop.eup %4254 }
 0x2dd   :  { %v1906_v33 = vsel %vm1893_vm2, %v4255_v32, 0.0 }
 0x2de   :  { %1907 = vadd.xlane.f32.xlu1 %v1906_v33 }
 0x2e0   :  { %v4257_v34 = vpop.eup %4256 }
 0x2e1   :  { %v1909_v35 = vsel %vm1893_vm2, %v4257_v34, 0.0 }
 0x2e2   :  { %1910 = vadd.xlane.f32.xlu1 %v1909_v35 }
 0x2f3   :  { %1962 = vrot.lane.b32.xlu1 %v4497_v42, %s4385_s7 }
 0x2f7   :  { %2216 = vrot.lane.b32.xlu1 %v2096_v54, %s4385_s7 }
 0x2fb   :  { %2213 = vrot.lane.b32.xlu1 %v4501_v37, %s4385_s7 }
 0x2ff   :  { %2464 = vrot.lane.b32.xlu1 %v4499_v43, %s4385_s7 }
 0x36b   :  { %v1908_v36 = vpop.xlane.xlu1 %1907 }
 0x36c   :  { %4258 = vrcp.f32 %v1908_v36 }
 0x36f   :  { %v1911_v38 = vpop.xlane.xlu1 %1910 }
 0x370   :  { %4260 = vrcp.f32 %v1911_v38 }
 0x373   :  { %v1963_v39 = vpop.permute.xlu1 %1962 }
 0x376   :  { %v4259_v41 = vpop.eup %4258 }
 0x377   :  { %v2217_v40 = vpop.permute.xlu1 %2216  ;;  %v1914_v42 = vmul.f32 %v4259_v41, %v4255_v32 }
 0x378   :  { %v2222_v44 = vsel %vm1845_vm1, %v2217_v40, 0 }
 0x379   :  { %3735 = vmatpush3.bf16.xpose.msra.mxu0 %v2222_v44 }
 0x37a   :  { %v4261_v45 = vpop.eup %4260  ;;  %3746 = vmatprep.subr.bf16.mxu0 %v4383_v11 }
 0x37b   :  { %v1915_v46 = vmul.f32 %v4261_v45, %v4257_v34  ;;  %v2214_v50 = vpop.permute.xlu1 %2213 }
 0x37d   :  { %v1916_v37 = vpack.c.bf16 %v1915_v46, %v1914_v42 }
 0x37f   :  { %3707 = vmatmul.mubr.msk.bf16.vlgmr.msra.gmra.mrb[16].mxu1 %vm1893_vm2, %v1916_v37  ;;  %v2465_v54 = vpop.permute.xlu1 %2464 }
 0x380   :  { %3711 = vmatpush3.bf16.xpose.msra.mxu1 %v1971_v49  ;;  %3737 = vmatmul.mubr.msk.bf16.vlgmr.msra.gmra.mrb[16].mxu0 %vm1845_vm1, %v2214_v50 }
 0x381   :  { %3747 = vmatpush3.bf16.xpose.msra.mxu0 %v2353_v51  ;;  %3712 = vmatprep.mubr.msk.bf16.mxu1 %vm4384_vm0, %v4383_v11 }
 0x382   :  { %3748 = vmatprep.mubr.msk.bf16.mxu0 %vm4384_vm0, %v4383_v11  ;;  %3758 = vmatprep.subr.bf16.mxu0 %v4383_v11 }
 0x383   :  { %3716 = vmatprep.subr.bf16.mxu1 %v4383_v11 }
 0x387   :  { %3713 = vmatmul.mubr.msk.bf16.vlgmr.msra.gmra.mrb[20].mxu1 %vm1845_vm1, %v1963_v39 }
 0x388   :  { %3749 = vmatmul.mubr.msk.bf16.vlgmr.msra.gmra.mrb[20].mxu0 %vm1845_vm1, %v4499_v43  ;;  %3718 = vmatprep.mubr.msk.bf16.mxu1 %vm4384_vm0, %v4383_v11 }
 0x389   :  { %3759 = vmatpush3.bf16.xpose.msra.mxu0 %v2473_v53  ;;  %3760 = vmatprep.mubr.msk.bf16.mxu0 %vm4384_vm0, %v4383_v11 }
 0x390   :  { %3761 = vmatmul.mubr.msk.bf16.vlgmr.msra.gmra.mrb[24].mxu0 %vm1845_vm1, %v2465_v54 }
 0x452   :  { %v4577_v5 = vpop.f32.mrb[16].mxu1 }
 0x453   :  { %v3708_v55 = vpop.f32.mrb[17].mxu1  ;;  %v2258_v47 = vpop.f32.mrb[16].mxu0 }
 0x454   :  { %v4579_v57 = vpop.f32.mrb[18].mxu1  ;;  %v3738_v58 = vpop.f32.mrb[17].mxu0  ;;  %v2259_v25 = vadd.f32 %v2258_v47, %v4528_v10 }
 0x455   :  { %v3709_v60 = vpop.f32.mrb[19].mxu1  ;;  %v2261_v61 = vpop.f32.mrb[18].mxu0 }
 0x456   :  { %v3739_v43 = vpop.f32.mrb[19].mxu0  ;;  %v2262_v16 = vadd.f32 %v2261_v61, %v4533_v14  ;;  %v2265_v31 = vsel %vm1893_vm2, %v2259_v25, -inf }
 0x458   :  { %v2268_v22 = vsel %vm1893_vm2, %v2262_v16, -inf }
 0x45a   :  { %v2007_v62 = vpop.f32.mrb[20].mxu1 }
 0x45b   :  { %v2008_v63 = vadd.f32 %v2007_v62, %v4528_v10  ;;  %v3714_v0 = vpop.f32.mrb[21].mxu1  ;;  %v2389_v1 = vpop.f32.mrb[20].mxu0 }
 0x45c   :  { %v2010_v2 = vpop.f32.mrb[22].mxu1  ;;  %v3750_v3 = vpop.f32.mrb[21].mxu0  ;;  %v2390_v30 = vadd.f32 %v2389_v1, %v4528_v10 }
 0x45d   :  { %v4585_v6 = vadd.f32 %v2010_v2, %v4533_v14  ;;  %v3715_v7 = vpop.f32.mrb[23].mxu1  ;;  %v2392_v8 = vpop.f32.mrb[22].mxu0  ;;  %v2014_v13 = vsel %vm1893_vm2, %v2008_v63, -inf }
 0x45e   :  { %2015 = vmax.xlane.f32.xlu0 %v2014_v13  ;;  %v3751_v15 = vpop.f32.mrb[23].mxu0  ;;  %v2393_v20 = vadd.f32 %v2392_v8, %v4533_v14  ;;  %v2396_v34 = vsel %vm1893_vm2, %v2390_v30, -inf }
 0x45f   :  { %v2017_v17 = vsel %vm1893_vm2, %v4585_v6, -inf }
 0x460   :  { %2018 = vmax.xlane.f32.xlu1 %v2017_v17  ;;  %v2399_v24 = vsel %vm1893_vm2, %v2393_v20, -inf }
 0x462   :  { %2146 = vmax.xlane.f32.xlu0 %v2145_v19 }
 0x463   :  { %v2509_v21 = vpop.f32.mrb[24].mxu0 }
 0x464   :  { %2269 = vmax.xlane.f32.xlu1 %v2268_v22  ;;  %v3762_v23 = vpop.f32.mrb[25].mxu0  ;;  %v4607_v33 = vadd.f32 %v2509_v21, %v4528_v10 }
 0x465   :  { %v2512_v26 = vpop.f32.mrb[26].mxu0 }
 0x466   :  { %2149 = vmax.xlane.f32.xlu0 %v2148_v27  ;;  %v3763_v28 = vpop.f32.mrb[27].mxu0  ;;  %v4599_v29 = vadd.f32 %v2512_v26, %v4533_v14  ;;  %v2516_v14 = vsel %vm1893_vm2, %v4607_v33, -inf }
 0x468   :  { %2400 = vmax.xlane.f32.xlu1 %v2399_v24  ;;  %v2519_v32 = vsel %vm1893_vm2, %v4599_v29, -inf }
 0x46a   :  { %2266 = vmax.xlane.f32.xlu0 %v2265_v31 }
 0x46c   :  { %2520 = vmax.xlane.f32.xlu1 %v2519_v32 }
 0x46e   :  { %2397 = vmax.xlane.f32.xlu0 %v2396_v34 }
 0x472   :  { %2517 = vmax.xlane.f32.xlu0 %v2516_v14 }
 0x4eb   :  { %v2016_v35 = vpop.xlane.xlu0 %2015 }
 0x4ec   :  { %v2020_v46 = vsub.f32 %v2008_v63, %v2016_v35 }
 0x4ed   :  { %v2019_v36 = vpop.xlane.xlu1 %2018 }
 0x4ee   :  { %v2022_v51 = vmul.f32 1.442695, %v2020_v46  ;;  %v2021_v58 = vsub.f32 %v4585_v6, %v2019_v36 }
 0x4ef   :  { %v2147_v38 = vpop.xlane.xlu0 %2146 }
 0x4f0   :  { %v2151_v39 = vsub.f32 %v2139_v4, %v2147_v38  ;;  %v2024_v63 = vmul.f32 1.442695, %v2021_v58 }
 0x4f1   :  { %v2270_v40 = vpop.xlane.xlu1 %2269 }
 0x4f2   :  { %v2153_v41 = vmul.f32 1.442695, %v2151_v39  ;;  %v2272_v44 = vsub.f32 %v2262_v16, %v2270_v40 }
 0x4f3   :  { %v2150_v45 = vpop.xlane.xlu0 %2149 }
 0x4f4   :  { %4262 = vpow2.f32 %v2153_v41  ;;  %v2152_v42 = vsub.f32 %v2142_v18, %v2150_v45  ;;  %v2275_v10 = vmul.f32 1.442695, %v2272_v44 }
 0x4f5   :  { %v2401_v37 = vpop.xlane.xlu1 %2400 }
 0x4f6   :  { %v2155_v48 = vmul.f32 1.442695, %v2152_v42  ;;  %v2403_v52 = vsub.f32 %v2393_v20, %v2401_v37 }
 0x4f7   :  { %v2267_v49 = vpop.xlane.xlu0 %2266 }
 0x4f8   :  { %4264 = vpow2.f32 %v2155_v48  ;;  %v2271_v50 = vsub.f32 %v2259_v25, %v2267_v49  ;;  %v2406_v60 = vmul.f32 1.442695, %v2403_v52 }
 0x4f9   :  { %4266 = vpow2.f32 %v2275_v10  ;;  %v2521_v22 = vpop.xlane.xlu1 %2520 }
 0x4fa   :  { %v2273_v53 = vmul.f32 1.442695, %v2271_v50  ;;  %v2523_v23 = vsub.f32 %v4599_v29, %v2521_v22  ;;  %v4175_v22 = vld [vmem:[#allocation5 + $0x7c] ss:$12 sps:$4 sm:$0xff]  }
 0x4fb   :  { %v2398_v54 = vpop.xlane.xlu0 %2397 }
 0x4fc   :  { %4268 = vpow2.f32 %v2273_v53  ;;  %v2402_v55 = vsub.f32 %v2390_v30, %v2398_v54  ;;  %v2526_v25 = vmul.f32 1.442695, %v2523_v23  ;;  %v4173_v23 = vld [vmem:[#allocation5 + $0x78] ss:$12 sps:$4 sm:$0xff]  }
 0x4fd   :  { %4270 = vpow2.f32 %v2022_v51 }
 0x4fe   :  { %v4612_v47 = vpop.eup %4262  ;;  %v2404_v61 = vmul.f32 1.442695, %v2402_v55 }
 0x4ff   :  { %v2157_v43 = vsel %vm1893_vm2, %v4612_v47, 0.0  ;;  %v2518_v19 = vpop.xlane.xlu0 %2517 }
 0x500   :  { %4272 = vpow2.f32 %v2404_v61  ;;  %2158 = vadd.xlane.f32.xlu0 %v2157_v43  ;;  %v2522_v20 = vsub.f32 %v4607_v33, %v2518_v19  ;;  %v4167_v19 = vld [vmem:[#allocation5 + $0x48] ss:$12 sps:$4 sm:$0xff]  }
 0x501   :  { %4274 = vpow2.f32 %v2406_v60 }
 0x502   :  { %v4617_v62 = vpop.eup %4264  ;;  %4276 = vpow2.f32 %v2024_v63  ;;  %v2524_v21 = vmul.f32 1.442695, %v2522_v20  ;;  %v4172_v20 = vld [vmem:[#allocation5 + $0x64] ss:$12 sps:$4 sm:$0xff]  }
 0x503   :  { %v2160_v0 = vsel %vm1893_vm2, %v4617_v62, 0.0  ;;  %v4621_v1 = vpop.eup %4266 }
 0x504   :  { %2161 = vadd.xlane.f32.xlu1 %v2160_v0  ;;  %v2280_v4 = vsel %vm1893_vm2, %v4621_v1, 0.0  ;;  %4278 = vpow2.f32 %v2524_v21  ;;  %v4170_v21 = vld [vmem:[#allocation5 + $0x60] ss:$12 sps:$4 sm:$0xff]  }
 0x505   :  { %4280 = vpow2.f32 %v2526_v25  ;;  %v4178_v25 = vld [vmem:[#allocation5 + $0x94] ss:$12 sps:$4 sm:$0xff]  }
 0x506   :  { %v4623_v2 = vpop.eup %4268 }
 0x507   :  { %v2277_v3 = vsel %vm1893_vm2, %v4623_v2, 0.0  ;;  %v4271_v6 = vpop.eup %4270 }
 0x508   :  { %2278 = vadd.xlane.f32.xlu0 %v2277_v3  ;;  %2281 = vadd.xlane.f32.xlu1 %v2280_v4  ;;  %v2026_v8 = vsel %vm1893_vm2, %v4271_v6, 0.0  ;;  %v4163_v3 = vld [vmem:[#allocation5 + $0x1c] ss:$12 sps:$4 sm:$0xff]   ;;  %v4161_v4 = vld [vmem:[#allocation5 + $0x18] ss:$12 sps:$4 sm:$0xff]  }
 0x50a   :  { %v4629_v7 = vpop.eup %4272 }
 0x50b   :  { %v2408_v13 = vsel %vm1893_vm2, %v4629_v7, 0.0  ;;  %v4634_v15 = vpop.eup %4274 }
 0x50c   :  { %2027 = vadd.xlane.f32.xlu0 %v2026_v8  ;;  %2409 = vadd.xlane.f32.xlu1 %v2408_v13  ;;  %v2411_v16 = vsel %vm1893_vm2, %v4634_v15, 0.0  ;;  %v4277_v17 = vpop.eup %4276  ;;  %v4186_v8 = vld [vmem:[#allocation5 + $0x8] ss:$12 sps:$4 sm:$0xff]   ;;  %v4164_v13 = vld [vmem:[#allocation5 + $0x30] ss:$12 sps:$4 sm:$0xff]  }
 0x50d   :  { %v2029_v18 = vsel %vm1893_vm2, %v4277_v17, 0.0 }
 0x50e   :  { %v4645_v26 = vpop.eup %4278 }
 0x50f   :  { %v2528_v27 = vsel %vm1893_vm2, %v4645_v26, 0.0 }
 0x510   :  { %2412 = vadd.xlane.f32.xlu1 %v2411_v16  ;;  %v4169_v16 = vld [vmem:[#allocation5 + $0x4c] ss:$12 sps:$4 sm:$0xff]  }
 0x514   :  { %2030 = vadd.xlane.f32.xlu1 %v2029_v18  ;;  %v4195_v18 = vld [vmem:[#allocation5 + $0xf8] ss:$12 sps:$4 sm:$0xff]  }
 0x522   :  { %2038 = vrot.lane.b32.xlu0 %v4509_v56, %s4385_s7  ;;  %v4649_v56 = vpop.eup %4280 }
 0x523   :  { %v2531_v28 = vsel %vm1893_vm2, %v4649_v56, 0.0 }
 0x525   :  { %2289 = vrot.lane.b32.xlu1 %v4514_v59, %s4385_s7 }
 0x541   :  { %2529 = vadd.xlane.f32.xlu0 %v2528_v27  ;;  %v4181_v27 = vld [vmem:[#allocation5 + $0xac] ss:$12 sps:$4 sm:$0xff]  }
 0x549   :  { %2532 = vadd.xlane.f32.xlu1 %v2531_v28  ;;  %v4184_v28 = vld [vmem:[#allocation5 + $0xc4] ss:$12 sps:$4 sm:$0xff]  }
 0x557   :  { %2540 = vrot.lane.b32.xlu0 %v4523_v9, %s4385_s7 }
 0x58d   :  { %v2159_v24 = vpop.xlane.xlu0 %2158 }
 0x591   :  { %v2162_v29 = vpop.xlane.xlu1 %2161 }
 0x595   :  { %v2279_v30 = vpop.xlane.xlu0 %2278  ;;  %v2282_v31 = vpop.xlane.xlu1 %2281 }
 0x599   :  { %v2028_v32 = vpop.xlane.xlu0 %2027  ;;  %v2410_v33 = vpop.xlane.xlu1 %2409 }
 0x59a   :  { %4282 = vrcp.f32 %v2028_v32  ;;  %v4192_v32 = vld [vmem:[#allocation5 + $0xf0] ss:$12 sps:$4 sm:$0xff]  }
 0x59d   :  { %v2039_v34 = vpop.permute.xlu0 %2038  ;;  %v2413_v14 = vpop.xlane.xlu1 %2412 }
 0x59e   :  { %3717 = vmatpush3.bf16.msra.mxu1 %v2039_v34  ;;  %v4199_v34 = vld [vmem:[#allocation5 + $0x10c] ss:$12 sps:$4 sm:$0xff]  }
 0x59f   :  { %3728 = vmatprep.subr.bf16.mxu1 %v4383_v11 }
 0x5a1   :  { %v2031_v35 = vpop.xlane.xlu1 %2030 }
 0x5a2   :  { %4284 = vrcp.f32 %v2031_v35  ;;  %v4197_v35 = vld [vmem:[#allocation5 + $0x108] ss:$12 sps:$4 sm:$0xff]  }
 0x5a3   :  { %4286 = vrcp.f32 %v2162_v29  ;;  %v4189_v29 = vld [vmem:[#allocation5 + $0xdc] ss:$12 sps:$4 sm:$0xff]  }
 0x5a4   :  { %4288 = vrcp.f32 %v2159_v24  ;;  %v4283_v36 = vpop.eup %4282  ;;  %v4182_v24 = vld [vmem:[#allocation5 + $0xc0] ss:$12 sps:$4 sm:$0xff]  }
 0x5a5   :  { %4290 = vrcp.f32 %v2279_v30  ;;  %v2034_v39 = vmul.f32 %v4283_v36, %v4271_v6  ;;  %v2290_v49 = vpop.permute.xlu1 %2289  ;;  %v4166_v6 = vld [vmem:[#allocation5 + $0x34] ss:$12 sps:$4 sm:$0xff]   ;;  %v4187_v30 = vld [vmem:[#allocation5 + $0xd8] ss:$12 sps:$4 sm:$0xff]   ;;  %v4201_v36 = vld [vmem:[#allocation5 + $0x50] ss:$12 sps:$4 sm:$0xff]  }
 0x5a6   :  { %4292 = vrcp.f32 %v2282_v31  ;;  %v4194_v31 = vld [vmem:[#allocation5 + $0xf4] ss:$12 sps:$4 sm:$0xff]  }
 0x5a7   :  { %4294 = vrcp.f32 %v2413_v14  ;;  %v4200_v14 = vld [vmem:[#allocation5 + $0x110] ss:$12 sps:$4 sm:$0xff]  }
 0x5a8   :  { %4296 = vrcp.f32 %v2410_v33  ;;  %v4196_v33 = vld [vmem:[#allocation5 + $0x38] ss:$12 sps:$4 sm:$0xff]  }
 0x5ac   :  { %v4285_v38 = vpop.eup %4284 }
 0x5ad   :  { %v2035_v40 = vmul.f32 %v4285_v38, %v4277_v17  ;;  %v4287_v44 = vpop.eup %4286  ;;  %v4191_v17 = vld [vmem:[#allocation5 + $0x20] ss:$12 sps:$4 sm:$0xff]   ;;  %v4204_v38 = vld [vmem:[#allocation5 + $0x124] ss:$12 sps:$4 sm:$0xff]  }
 0x5ae   :  { %v4289_v45 = vpop.eup %4288  ;;  %v2166_v42 = vmul.f32 %v4287_v44, %v4617_v62  ;;  %v4209_v44 = vld [vmem:[#allocation5 + $0x13c] ss:$12 sps:$4 sm:$0xff]  }
 0x5af   :  { %v2036_v41 = vpack.c.bf16 %v2035_v40, %v2034_v39  ;;  %v2165_v46 = vmul.f32 %v4289_v45, %v4612_v47  ;;  %v4291_v10 = vpop.eup %4290  ;;  %v4205_v39 = vld [vmem:[#allocation5 + $0x128] ss:$12 sps:$4 sm:$0xff]   ;;  %v4202_v40 = vld [vmem:[#allocation5 + $0x120] ss:$12 sps:$4 sm:$0xff]  }
 0x5b0   :  { %v4293_v37 = vpop.eup %4292  ;;  %v4210_v45 = vld [vmem:[#allocation5 + $0x140] ss:$12 sps:$4 sm:$0xff]  }
 0x5b1   :  { %3719 = vmatmul.mubr.msk.bf16.vlgmr.msra.gmra.mrb[24].mxu1 %vm1893_vm2, %v2036_v41  ;;  %v2167_v48 = vpack.c.bf16 %v2166_v42, %v2165_v46  ;;  %v2286_v50 = vmul.f32 %v4293_v37, %v4621_v1  ;;  %v4295_v52 = vpop.eup %4294  ;;  %v4158_v1 = vld [vmem:[#allocation5] ss:$12 sps:$4 sm:$0xff]   ;;  %v4206_v41 = vld [vmem:[#allocation5 + $0x68] ss:$12 sps:$4 sm:$0xff]   ;;  %v4207_v46 = vld [vmem:[#allocation5 + $0x138] ss:$12 sps:$4 sm:$0xff]  }
 0x5b2   :  { %3729 = vmatpush3.bf16.msra.mxu1 %v4514_v59  ;;  %3730 = vmatprep.mubr.msk.bf16.mxu1 %vm4384_vm0, %v4383_v11  ;;  %v2285_v59 = vmul.f32 %v4291_v10, %v4623_v2  ;;  %v4297_v53 = vpop.eup %4296  ;;  %v2417_v54 = vmul.f32 %v4295_v52, %v4634_v15  ;;  %v4160_v2 = vld [vmem:[#allocation5 + $0x4] ss:$12 sps:$4 sm:$0xff]   ;;  %v4190_v15 = vld [vmem:[#allocation5 + $0xe0] ss:$12 sps:$4 sm:$0xff]  }
 0x5b3   :  { %3740 = vmatprep.subr.bf16.mxu1 %v4383_v11  ;;  %v2416_v55 = vmul.f32 %v4297_v53, %v4629_v7  ;;  %3097 = vmatprep.subr.bf16.mxu0 %v4160_v2  ;;  %v4185_v7 = vld [vmem:[#allocation5 + $0xc8] ss:$12 sps:$4 sm:$0xff]   ;;  %v4211_v10 = vld [vmem:[#allocation5 + $0x80] ss:$12 sps:$4 sm:$0xff]   ;;  %v4212_v52 = vld [vmem:[#allocation5 + $0x150] ss:$12 sps:$4 sm:$0xff]  }
 0x5b4   :  { %v2287_v51 = vpack.c.bf16 %v2286_v50, %v2285_v59  ;;  %3098 = vmatpush1.bf16.msra.mxu0 %v4158_v1  ;;  %v4214_v37 = vld [vmem:[#allocation5 + $0x154] ss:$12 sps:$4 sm:$0xff]   ;;  %v4215_v59 = vld [vmem:[#allocation5 + $0x158] ss:$12 sps:$4 sm:$0xff]  }
 0x5b5   :  { %v2418_v47 = vpack.c.bf16 %v2417_v54, %v2416_v55  ;;  %3099 = vmatprep.subr.bf16.mxu0 %v4163_v3  ;;  %v4216_v53 = vld [vmem:[#allocation5 + $0x98] ss:$12 sps:$4 sm:$0xff]   ;;  %v4217_v55 = vld [vmem:[#allocation5 + $0x168] ss:$12 sps:$4 sm:$0xff]  }
 0x5b8   :  { %3100 = vmatpush1.bf16.msra.mxu0 %v4161_v4 }
 0x5b9   :  { %3731 = vmatmul.mubr.msk.bf16.vlgmr.msra.gmra.mrb[28].mxu1 %vm1893_vm2, %v2167_v48  ;;  %3101 = vmatprep.subr.bf16.mxu0 %v4166_v6 }
 0x5ba   :  { %3741 = vmatpush3.bf16.msra.mxu1 %v2290_v49  ;;  %3742 = vmatprep.mubr.msk.bf16.mxu1 %vm4384_vm0, %v4383_v11 }
 0x5bb   :  { %3752 = vmatprep.subr.bf16.mxu1 %v4383_v11 }
 0x5bc   :  { %3102 = vmatpush1.bf16.msra.mxu0 %v4164_v13 }
 0x5bd   :  { %3103 = vmatprep.subr.bf16.mxu0 %v4169_v16 }
 0x5c0   :  { %3104 = vmatpush1.bf16.msra.mxu0 %v4167_v19 }
 0x5c1   :  { %3743 = vmatmul.mubr.msk.bf16.vlgmr.msra.gmra.mrb[32].mxu1 %vm1893_vm2, %v2287_v51  ;;  %3105 = vmatprep.subr.bf16.mxu0 %v4172_v20 }
 0x5c2   :  { %3753 = vmatpush3.bf16.msra.mxu1 %v4523_v9  ;;  %3754 = vmatprep.mubr.msk.bf16.mxu1 %vm4384_vm0, %v4383_v11 }
 0x5c3   :  { %3764 = vmatprep.subr.bf16.mxu1 %v4383_v11 }
 0x5c4   :  { %3106 = vmatpush1.bf16.msra.mxu0 %v4170_v21 }
 0x5c5   :  { %3107 = vmatprep.subr.bf16.mxu0 %v4175_v22 }
 0x5c8   :  { %3108 = vmatpush1.bf16.msra.mxu0 %v4173_v23 }
 0x5c9   :  { %3755 = vmatmul.mubr.msk.bf16.vlgmr.msra.gmra.mrb[36].mxu1 %vm1893_vm2, %v2418_v47  ;;  %3109 = vmatprep.subr.bf16.mxu0 %v4178_v25  ;;  %v4219_v47 = vld [vmem:[#allocation5 + $0x16c] ss:$12 sps:$4 sm:$0xff]  }
 0x5ca   :  { %3766 = vmatprep.mubr.msk.bf16.mxu1 %vm4384_vm0, %v4383_v11 }
 0x5ce   :  { %v2530_v58 = vpop.xlane.xlu0 %2529 }
 0x5cf   :  { %4298 = vrcp.f32 %v2530_v58 }
 0x5d2   :  { %v2541_v60 = vpop.permute.xlu0 %2540 }
 0x5d3   :  { %3765 = vmatpush3.bf16.msra.mxu1 %v2541_v60  ;;  %v4220_v60 = vld [vmem:[#allocation5 + $0x170] ss:$12 sps:$4 sm:$0xff]  }
 0x5d4   :  { %3647 = vmatprep.subr.bf16.mxu1 %v4185_v7 }
 0x5d6   :  { %v2533_v9 = vpop.xlane.xlu1 %2532 }
 0x5d7   :  { %4300 = vrcp.f32 %v2533_v9  ;;  %v4221_v9 = vld [vmem:[#allocation5 + $0xb0] ss:$12 sps:$4 sm:$0xff]  }
 0x5d9   :  { %v4299_v61 = vpop.eup %4298 }
 0x5da   :  { %v2536_v62 = vmul.f32 %v4299_v61, %v4645_v26  ;;  %v4176_v26 = vld [vmem:[#allocation5 + $0x90] ss:$12 sps:$4 sm:$0xff]  }
 0x5db   :  { %3110 = vmatpush1.bf16.msra.mxu0 %v4176_v26 }
 0x5dc   :  { %3111 = vmatprep.subr.bf16.mxu0 %v4181_v27 }
 0x5e1   :  { %v4301_v43 = vpop.eup %4300 }
 0x5e2   :  { %v2537_v63 = vmul.f32 %v4301_v43, %v4649_v56  ;;  %v4179_v56 = vld [vmem:[#allocation5 + $0xa8] ss:$12 sps:$4 sm:$0xff]  }
 0x5e3   :  { %3112 = vmatpush1.bf16.msra.mxu0 %v4179_v56 }
 0x5e4   :  { %v2538_v0 = vpack.c.bf16 %v2537_v63, %v2536_v62  ;;  %3113 = vmatprep.subr.bf16.mxu0 %v4184_v28  ;;  %v4224_v62 = vld [vmem:[#allocation5 + $0x184] ss:$12 sps:$4 sm:$0xff]  }
 0x5e6   :  { %3767 = vmatmul.mubr.msk.bf16.vlgmr.msra.gmra.mrb[40].mxu1 %vm1893_vm2, %v2538_v0 }
 0x5e7   :  { %3648 = vmatpush3.bf16.msra.mxu1 %v4186_v8  ;;  %3114 = vmatpush1.bf16.msra.mxu0 %v4182_v24 }
 0x5e8   :  { %3649 = vmatprep.subr.bf16.mxu1 %v4190_v15  ;;  %3115 = vmatprep.subr.bf16.mxu0 %v4189_v29 }
 0x5eb   :  { %3650 = vmatpush3.bf16.msra.mxu1 %v4191_v17  ;;  %3116 = vmatpush1.bf16.msra.mxu0 %v4187_v30  ;;  %v4222_v30 = vld [vmem:[#allocation5 + $0x180] ss:$12 sps:$4 sm:$0xff]  }
 0x5ec   :  { %3651 = vmatprep.subr.bf16.mxu1 %v4195_v18  ;;  %3117 = vmatprep.subr.bf16.mxu0 %v4194_v31  ;;  %v4225_v31 = vld [vmem:[#allocation5 + $0x188] ss:$12 sps:$4 sm:$0xff]  }
 0x5ef   :  { %3118 = vmatpush1.bf16.msra.mxu0 %v4192_v32  ;;  %3652 = vmatpush3.bf16.msra.mxu1 %v4196_v33  ;;  %v4228_v32 = vld [vmem:[#allocation5 + $0x19c] ss:$12 sps:$4 sm:$0xff]   ;;  %v4232_v33 = vld [vmem:[#allocation5 + $0x1b4] ss:$12 sps:$4 sm:$0xff]  }
 0x5f0   :  { %3119 = vmatprep.subr.bf16.mxu0 %v4199_v34  ;;  %3653 = vmatprep.subr.bf16.mxu1 %v4200_v14  ;;  %v4230_v34 = vld [vmem:[#allocation5 + $0x1b0] ss:$12 sps:$4 sm:$0xff]   ;;  %v4233_v14 = vld [vmem:[#allocation5 + $0x1b8] ss:$12 sps:$4 sm:$0xff]  }
 0x5f3   :  { %3120 = vmatpush1.bf16.msra.mxu0 %v4197_v35  ;;  %3654 = vmatpush3.bf16.msra.mxu1 %v4201_v36  ;;  %v4236_v35 = vld [vmem:[#allocation5 + $0x1cc] ss:$12 sps:$4 sm:$0xff]   ;;  %v4234_v36 = vld [vmem:[#allocation5 + $0x1c8] ss:$12 sps:$4 sm:$0xff]  }
 0x5f4   :  { %3121 = vmatprep.subr.bf16.mxu0 %v4204_v38  ;;  %3655 = vmatprep.subr.bf16.mxu1 %v4205_v39  ;;  %v4237_v38 = vld [vmem:[#allocation5 + $0x1d0] ss:$12 sps:$4 sm:$0xff]  }
 0x5f5   :  { %v4240_v39 = vld [vmem:[#allocation5 + $0x1e4] ss:$12 sps:$4 sm:$0xff]  }
 0x5f7   :  { %3122 = vmatpush1.bf16.msra.mxu0 %v4202_v40  ;;  %3656 = vmatpush3.bf16.msra.mxu1 %v4206_v41  ;;  %v4241_v40 = vld [vmem:[#allocation5 + $0x1e8] ss:$12 sps:$4 sm:$0xff]  }
 0x5f8   :  { %3123 = vmatprep.subr.bf16.mxu0 %v4209_v44  ;;  %3657 = vmatprep.subr.bf16.mxu1 %v4210_v45  ;;  %v4244_v41 = vld [vmem:[#allocation5 + $0x1fc] ss:$12 sps:$4 sm:$0xff]   ;;  %v4242_v44 = vld [vmem:[#allocation5 + $0x1f8] ss:$12 sps:$4 sm:$0xff]   ;;  %v4245_v45 = vld [vmem:[#allocation5 + $0x200] ss:$12 sps:$4 sm:$0xff]  }
 0x5fb   :  { %3124 = vmatpush1.bf16.msra.mxu0 %v4207_v46  ;;  %3658 = vmatpush3.bf16.msra.mxu1 %v4211_v10  ;;  %v4246_v46 = vld [vmem:[#allocation5 + $0x210] ss:$12 sps:$4 sm:$0xff]   ;;  %v4249_v10 = vld [vmem:[#allocation5 + $0x218] ss:$12 sps:$4 sm:$0xff]  }
 0x5fc   :  { %3125 = vmatprep.subr.bf16.mxu0 %v4214_v37  ;;  %3659 = vmatprep.subr.bf16.mxu1 %v4215_v59  ;;  %v4250_v37 = vld [vmem:[#allocation5 + $0x228] ss:$12 sps:$4 sm:$0xff]  }
 0x5ff   :  { %3126 = vmatpush1.bf16.msra.mxu0 %v4212_v52  ;;  %3660 = vmatpush3.bf16.msra.mxu1 %v4216_v53 }
 0x600   :  { %3127 = vmatprep.subr.bf16.mxu0 %v4219_v47  ;;  %3661 = vmatprep.subr.bf16.mxu1 %v4220_v60 }
 0x603   :  { %3128 = vmatpush1.bf16.msra.mxu0 %v4217_v55  ;;  %3662 = vmatpush3.bf16.msra.mxu1 %v4221_v9 }
 0x604   :  { %3770 = vmatprep.subr.bf16.mxu1 %v4383_v11  ;;  %3140 = vmatprep.subr.bf16.mxu0 %v4224_v62 }
 0x684   :  { %v2078_v42 = vpop.f32.mrb[24].mxu1 }
 0x685   :  { %v3720_v48 = vpop.f32.mrb[25].mxu1 }
 0x686   :  { %v2081_v49 = vpop.f32.mrb[26].mxu1  ;;  %v4252_v48 = vld [vmem:[#allocation5 + $0x22c] ss:$12 sps:$4 sm:$0xff]  }
 0x687   :  { %v3832_v50 = vpack.i.bf16 %v2081_v49, %v2078_v42  ;;  %v3721_v51 = vpop.f32.mrb[27].mxu1  ;;  %v4248_v42 = vld [vmem:[#allocation5 + $0x214] ss:$12 sps:$4 sm:$0xff]   ;;  %v4253_v49 = vld [vmem:[#allocation5 + $0x230] ss:$12 sps:$4 sm:$0xff]  }
 0x689   :  { %3833 = vrot.lane.b32.xlu0 %v3832_v50, %s4385_s7 }
 0x68c   :  { %v2205_v54 = vpop.f32.mrb[28].mxu1 }
 0x68d   :  { %v3732_v58 = vpop.f32.mrb[29].mxu1 }
 0x68e   :  { %v2208_v61 = vpop.f32.mrb[30].mxu1 }
 0x68f   :  { %v3733_v43 = vpop.f32.mrb[31].mxu1 }
 0x694   :  { %v2329_v63 = vpop.f32.mrb[32].mxu1 }
 0x695   :  { %v3744_v0 = vpop.f32.mrb[33].mxu1 }
 0x696   :  { %v2332_v1 = vpop.f32.mrb[34].mxu1 }
 0x697   :  { %v3827_v2 = vpack.i.bf16 %v2332_v1, %v2329_v63  ;;  %v3745_v3 = vpop.f32.mrb[35].mxu1  ;;  %v2696_v63 = vld [vmem:[%s4728_s3] sm:$0x7]  ;;  %s4348_s3 = scalar_lea.vmem %s3277_s10, 768 }
 0x698   :  { %p4349_p2 = scmp.ne.s32.totalorder %s3277_s10, %s4348_s3  ;;  %p4354_p4 = scmp.lt.s32.totalorder %s4348_s3, %s4348_s3 }
 0x699   :  { %3828 = vrot.lane.b32.xlu1 %v3827_v2, %s4385_s7 }
 0x69a   :  { %p4355_p5 = por %p4354_p4, %p4353_p3 }
 0x69c   :  { %v4685_v4 = vpop.f32.mrb[36].mxu1  ;;  %p4356_p6 = pnand %p4355_p5, %p4349_p2 }
 0x69d   :  { %v3756_v6 = vpop.f32.mrb[37].mxu1 }
 0x69e   :  { %v4687_v7 = vpop.f32.mrb[38].mxu1 }
 0x69f   :  { %v3757_v8 = vpop.f32.mrb[39].mxu1 }
 0x6b9   :  { %v2580_v13 = vpop.f32.mrb[40].mxu1 }
 0x6ba   :  { %v3768_v15 = vpop.f32.mrb[41].mxu1 }
 0x6bb   :  { %v2583_v16 = vpop.f32.mrb[42].mxu1 }
 0x6bc   :  { %v3837_v17 = vpack.i.bf16 %v2583_v16, %v2580_v13  ;;  %v3769_v18 = vpop.f32.mrb[43].mxu1 }
 0x6be   :  { %3838 = vrot.lane.b32.xlu1 %v3837_v17, %s4385_s7 }
 0x6fb   :  { %v3834_v19 = vpop.permute.xlu0 %3833 }
 0x6fc   :  { %v3836_v20 = vunpack.i.h.bf16 %v3834_v19  ;;  %v3835_v21 = vunpack.i.l.bf16 %v3834_v19 }
 0x6fe   :  { %v2094_v22 = vsel %vm1845_vm1, %v4579_v57, %v3836_v20  ;;  %v2093_v23 = vsel %vm1845_vm1, %v4577_v5, %v3835_v21  ;;  %v4226_v57 = vld [vmem:[#allocation5 + $0x198] ss:$12 sps:$4 sm:$0xff]   ;;  %v4229_v5 = vld [vmem:[#allocation5 + $0x1a0] ss:$12 sps:$4 sm:$0xff]  }
 0x6ff   :  { %v2597_v25 = vpack.c.bf16 %v2094_v22, %v2093_v23 }
 0x70b   :  { %v3829_v26 = vpop.permute.xlu1 %3828 }
 0x70c   :  { %v3831_v27 = vunpack.i.h.bf16 %v3829_v26  ;;  %v3830_v56 = vunpack.i.l.bf16 %v3829_v26 }
 0x70e   :  { %v2344_v28 = vsel %vm1845_vm1, %v2205_v54, %v3830_v56  ;;  %v2345_v24 = vsel %vm1845_vm1, %v2208_v61, %v3831_v27  ;;  %v2698_v61 = vlaneseq }
 0x70f   :  { %v2598_v29 = vpack.c.bf16 %v2345_v24, %v2344_v28 }
 0x710   :  { %v2699_v43 = vshrl.u32 %v2698_v61, 7 }
 0x711   :  { %3129 = vmatprep.mubr.bf16.mxu0 %v2598_v29  ;;  %3215 = vmatprep.mubr.bf16.mxu1 %v2598_v29 }
 0x712   :  { %3130 = vmatmul.mubr.bf16.vlgmr.msra.gmra.mrb[28].mxu0 %v2597_v25  ;;  %3216 = vmatmul.mubr.bf16.vlgmr.msra.gmra.mrb[44].mxu1 %v2597_v25  ;;  %v2708_v62 = vsub.s32 2, %v2699_v43  ;;  %v2700_v0 = vsub.s32 0, %v2699_v43  ;;  %v2704_v1 = vsub.s32 1, %v2699_v43 }
 0x713   :  { %3141 = vmatpush1.bf16.msra.mxu0 %v4222_v30  ;;  %3771 = vmatpush3.bf16.msra.mxu1 %v4225_v31 }
 0x714   :  { %3142 = vmatprep.subr.bf16.mxu0 %v4228_v32  ;;  %3772 = vmatprep.subr.bf16.mxu1 %v4383_v11  ;;  %v2709_v2 = vrot.slane %v2696_v63, %v2708_v62  ;;  %v2701_v3 = vrot.slane %v2696_v63, %v2700_v0 }
 0x715   :  { %3172 = vmatprep.mubr.bf16.mxu0 %v4382_v12  ;;  %3786 = vmatprep.mubr.msk.bf16.mxu1 %vm4384_vm0, %v4383_v11  ;;  %v4238_v12 = vld [vmem:[#allocation5 + $0x1e0] ss:$12 sps:$4 sm:$0xff]  }
 0x717   :  { %3143 = vmatpush1.bf16.msra.mxu0 %v4226_v57  ;;  %3773 = vmatpush3.bf16.msra.mxu1 %v4229_v5 }
 0x718   :  { %3144 = vmatprep.subr.bf16.mxu0 %v4232_v33  ;;  %3774 = vmatprep.subr.bf16.mxu1 %v4383_v11 }
 0x71b   :  { %3145 = vmatpush1.bf16.msra.mxu0 %v4230_v34  ;;  %3775 = vmatpush3.bf16.msra.mxu1 %v4233_v14 }
 0x71c   :  { %3146 = vmatprep.subr.bf16.mxu0 %v4236_v35  ;;  %3776 = vmatprep.subr.bf16.mxu1 %v4383_v11 }
 0x71f   :  { %3147 = vmatpush1.bf16.msra.mxu0 %v4234_v36  ;;  %3777 = vmatpush3.bf16.msra.mxu1 %v4237_v38 }
 0x720   :  { %3148 = vmatprep.subr.bf16.mxu0 %v4240_v39  ;;  %3778 = vmatprep.subr.bf16.mxu1 %v4383_v11 }
 0x723   :  { %3149 = vmatpush1.bf16.msra.mxu0 %v4238_v12  ;;  %3779 = vmatpush3.bf16.msra.mxu1 %v4241_v40 }
 0x724   :  { %3150 = vmatprep.subr.bf16.mxu0 %v4244_v41  ;;  %3780 = vmatprep.subr.bf16.mxu1 %v4383_v11 }
 0x727   :  { %3151 = vmatpush1.bf16.msra.mxu0 %v4242_v44  ;;  %3781 = vmatpush3.bf16.msra.mxu1 %v4245_v45 }
 0x728   :  { %3152 = vmatprep.subr.bf16.mxu0 %v4248_v42  ;;  %3782 = vmatprep.subr.bf16.mxu1 %v4383_v11 }
 0x72b   :  { %3153 = vmatpush1.bf16.msra.mxu0 %v4246_v46  ;;  %3783 = vmatpush3.bf16.msra.mxu1 %v4249_v10 }
 0x72c   :  { %3154 = vmatprep.subr.bf16.mxu0 %v4252_v48  ;;  %3784 = vmatprep.subr.bf16.mxu1 %v4383_v11 }
 0x72f   :  { %3155 = vmatpush1.bf16.msra.mxu0 %v4250_v37  ;;  %3785 = vmatpush3.bf16.msra.mxu1 %v4253_v49 }
 0x730   :  { %v3839_v59 = vpop.permute.xlu1 %3838 }
 0x731   :  { %v3841_v50 = vunpack.i.h.bf16 %v3839_v59  ;;  %v3840_v51 = vunpack.i.l.bf16 %v3839_v59 }
 0x733   :  { %v2596_v52 = vsel %vm1845_vm1, %v4687_v7, %v3841_v50  ;;  %v2595_v53 = vsel %vm1845_vm1, %v4685_v4, %v3840_v51  ;;  %v2705_v4 = vrot.slane %v2696_v63, %v2704_v1 }
 0x734   :  { %v2599_v54 = vpack.c.bf16 %v2596_v52, %v2595_v53 }
 0x736   :  { %3173 = vmatmul.mubr.bf16.vlgmr.msra.gmra.mrb[28].mxu0 %v2599_v54  ;;  %3787 = vmatmul.mubr.bf16.vlgmr.msra.gmra.mrb[48].mxu1 %v2599_v54 }
 0x7e5   :  { %v3663_v55 = vpop.f32.mrb[44].mxu1 }
 0x7e6   :  { %v3664_v47 = vpop.f32.mrb[45].mxu1 }
 0x7e7   :  { %v3665_v58 = vadd.f32 %v3664_v47, %v3663_v55  ;;  %v3666_v60 = vpop.f32.mrb[46].mxu1 }
 0x7e8   :  { %v3667_v9 = vpop.f32.mrb[47].mxu1 }
 0x7e9   :  { %v3668_v11 = vadd.f32 %v3667_v9, %v3666_v60  ;;  %v3218_v6 = vadd.f32 %v3665_v58, %v2709_v2 }
 0x7eb   :  { %v3221_v18 = vadd.f32 %v3668_v11, %v2709_v2 }
 0x809   :  { %v3174_v7 = vpop.f32.mrb[28].mxu0  ;;  %v3258_v8 = vpop.f32.mrb[48].mxu1 }
 0x80a   :  { %v3790_v13 = vadd.f32 %v3174_v7, %v2701_v3  ;;  %v3259_v15 = vadd.f32 %v3258_v8, %v3218_v6  ;;  %v3176_v16 = vpop.f32.mrb[29].mxu0  ;;  %v3788_v17 = vpop.f32.mrb[49].mxu1 }
 0x80b   :  { %v3791_v19 = vadd.f32 %v3176_v16, %v2705_v4  ;;  %v3178_v20 = vpop.f32.mrb[30].mxu0  ;;  %v3261_v21 = vpop.f32.mrb[50].mxu1 }
 0x80c   :  { %3265 = vst [vmem:[#allocation7] sm:$0xff] %v3790_v13  ;;  %3267 = vst [vmem:[#allocation7 + $0x10] sm:$0xff] %v3259_v15  ;;  %v3792_v22 = vadd.f32 %v3178_v20, %v2701_v3  ;;  %v3262_v23 = vadd.f32 %v3261_v21, %v3221_v18  ;;  %v3180_v25 = vpop.f32.mrb[31].mxu0  ;;  %v3789_v26 = vpop.f32.mrb[51].mxu1 }
 0x80d   :  { %3266 = vst [vmem:[#allocation7 + $0x8] sm:$0xff] %v3791_v19  ;;  %v3793_v27 = vadd.f32 %v3180_v25, %v2705_v4 }
 0x80e   :  { %3268 = vst [vmem:[#allocation7 + $0x18] sm:$0xff] %v3792_v22  ;;  %3270 = vst [vmem:[#allocation7 + $0x28] sm:$0xff] %v3262_v23 }
 0x80f   :  { %3269 = vst [vmem:[#allocation7 + $0x20] sm:$0xff] %v3793_v27 }
 0x810   :  { %4359 = shalt.err (!%p4356_p6)
}
 0x811   :  { %s4360_s13 = scalar_lea.hbm %s4730_s5, 768 }
 0x812   :  { %p4361_p7 = scmp.ne.s32.totalorder %s4730_s5, %s4360_s13  ;;  %p4364_p8 = scmp.lt.u32.totalorder %s4360_s13, %s4730_s5 }
 0x814   :  { %p4366_p9 = pnand %p4364_p8, %p4361_p7 }
 0x816   :  { %4369 = shalt.err (!%p4366_p9)
}
 0x817   :  { %s4387_s17 = smov 384   ;;  %s4388_s18 = smov 24  }
 0x818   :  { %3282 = dma.vmem_to_hbm [thread:$0]  %s3277_s10, 768, %s4730_s5, [#allocation4], %s4387_s17, %s4387_s17, %s4388_s18  }
 0x819   :  { %4374 = dma.done.wait [#allocation4], 768  }
 0x81a   :  { %4375 = vsyncadd [#allocation4], 4294966528 }
 0x81b   :  { %3286 = vsyncpa [#allocation3], 1 }
 0x81c   :  { %3287 = vsyncpa [#allocation6], 1 }
 0x81d   :  { %3288 = vsyncpa [#allocation4], 1 }

</bundles_post_ra>
